<compile_context>
chip_gen: v6e
topology: v6e:2x2x1
jax: 0.10.0
libtpu: 0.0.40
codegen_flags: <defaults>
</compile_context>

<pallas_src>
import math

import jax
import jax.numpy as jnp
from jax import lax
from jax.experimental import pallas as pl
from jax.experimental.pallas import tpu as pltpu

# ---------------- problem sizes (small, consistent with the module) ----------------
B = 2            # batch
S = 8            # sequence length == seq_size (classifier is Linear(seq_size, n_out))
N_IN = 4         # n_in
D = 32           # n_hidden (d_model)
NHEAD = 2
NUM_LAYERS = 2
DFF = 16         # dim_feedforward
N_OUT = 4        # n_out
HD = D // NHEAD  # head dim
BS = B * S       # fused row count for position-wise ops
HBS = NHEAD * BS # head-stacked row count for attention
LN_EPS = 1e-5
NEG_INF = -1e30

# ---------------- single parameter-slab layout (rows x 128 lanes, f32) -------------
SLAB_W = 128
ROWS_PER_LAYER = 2 * D                      # 64 rows of matrices per layer
#   rows [l*64 +  0 : l*64 + 32): lanes 0:96 = wqkv[l] (per-head grouped), 96:128 = wo[l]
#   rows [l*64 + 32 : l*64 + 64): lanes 0:32 = w1 zero-padded, 32:64 = w2 zero-padded
R_WEMB = NUM_LAYERS * ROWS_PER_LAYER        # 128: rows 0:4 wemb, row 4 bemb (8-row block)
R_LVEC = R_WEMB + 8                         # 136: 8 rows/layer: bqkv,bo,b1,b2,g1,bt1,g2,bt2
R_WCLS = R_LVEC + NUM_LAYERS * 8            # 152: BS rows, tiled & (1/D)-scaled wcls
R_TAIL = R_WCLS + BS                        # 168: rows 0:B selection matrix, row B bcls
SLAB_ROWS = R_TAIL + 8                      # 176 (multiple of 8)


def _layer_norm(x, gamma, beta):
    mu = jnp.mean(x, axis=-1, keepdims=True)
    var = jnp.mean((x - mu) ** 2, axis=-1, keepdims=True)
    return (x - mu) * lax.rsqrt(var + LN_EPS) * gamma + beta


def _softmax_exact(x):
    m = jnp.max(x, axis=-1, keepdims=True)
    e = jnp.exp(x - m)
    return e / jnp.sum(e, axis=-1, keepdims=True)


def _softmax_approx(x):
    # attention softmax: approx reciprocal runs on the otherwise-idle EUP slot
    m = jnp.max(x, axis=-1, keepdims=True)
    e = jnp.exp(x - m)
    return e * pl.reciprocal(jnp.sum(e, axis=-1, keepdims=True), approx=True)


# ------------------------------- Pallas kernel -------------------------------------
def transformer_kernel(x_ref, slab_ref, out_ref):
    x = x_ref[...]                                           # (BS, N_IN)

    emb = slab_ref[R_WEMB:R_WEMB + 8, :]                     # aligned (8,128) load
    wemb = emb[0:N_IN, 0:D]
    bemb = emb[N_IN:N_IN + 1, 0:D]
    h = jnp.dot(x, wemb, preferred_element_type=jnp.float32) + bemb      # (BS, D)

    # block-diagonal additive mask over (head, batch) groups of S rows/cols.
    # S is a power of two -> xor trick, no integer divides on the prologue path.
    row = lax.broadcasted_iota(jnp.int32, (HBS, HBS), 0)
    col = lax.broadcasted_iota(jnp.int32, (HBS, HBS), 1)
    attn_mask = jnp.where((row ^ col) < S, 0.0, NEG_INF).astype(jnp.float32)

    scale = 1.0 / math.sqrt(HD)

    for l in range(NUM_LAYERS):                              # statically unrolled (2)
        m0 = l * ROWS_PER_LAYER
        blk_a = slab_ref[m0:m0 + D, :]                       # (D,128): [wqkv | wo]
        blk_b = slab_ref[m0 + D:m0 + 2 * D, :]               # (D,128): [w1_pad | w2_pad]
        vec = slab_ref[R_LVEC + l * 8:R_LVEC + (l + 1) * 8, :]           # (8,128)

        wqkv = blk_a[:, 0:3 * D]                             # per-head grouped columns
        w1 = blk_b[:, 0:D]                                   # (D,D), cols DFF: zero
        w2 = blk_b[:, D:2 * D]                               # (D,D), rows DFF: zero
        bqkv = vec[0:1, 0:3 * D]
        bo, b1, b2 = vec[1:2, 0:D], vec[2:3, 0:D], vec[3:4, 0:D]
        g1, bt1 = vec[4:5, 0:D], vec[5:6, 0:D]
        g2, bt2 = vec[6:7, 0:D], vec[7:8, 0:D]

        # ---- fused QKV projection: ONE MXU matmul per layer ----
        qkv = jnp.dot(h, wqkv, preferred_element_type=jnp.float32) + bqkv   # (BS, 3D)

        # stack heads along sublanes: (NHEAD*BS, 3*HD); q/k/v are static lane views
        qkv_st = jnp.concatenate(
            [qkv[:, hh * 3 * HD:(hh + 1) * 3 * HD] for hh in range(NHEAD)], axis=0)
        q_st = qkv_st[:, 0:HD]
        k_st = qkv_st[:, HD:2 * HD]
        v_st = qkv_st[:, 2 * HD:3 * HD]

        # one scores / softmax / context pass for BOTH heads and the whole batch
        s = lax.dot_general(q_st, k_st, (((1,), (1,)), ((), ())),
                            preferred_element_type=jnp.float32) * scale + attn_mask
        p = _softmax_approx(s)                               # (HBS, HBS) block-diagonal
        ctx = jnp.dot(p, v_st, preferred_element_type=jnp.float32)         # (HBS, HD)

        # fold the output projection per head from the sublane halves of ctx
        attn = bo
        for hh in range(NHEAD):                              # statically unrolled (2)
            attn = attn + jnp.dot(ctx[hh * BS:(hh + 1) * BS, :],
                                  blk_a[hh * HD:(hh + 1) * HD, 3 * D:4 * D],
                                  preferred_element_type=jnp.float32)

        # post-norm residual 1
        h = _layer_norm(h + attn, g1, bt1)

        # ---- feed-forward (relu); weights zero-padded DFF -> D host-side ----
        ff = jnp.maximum(jnp.dot(h, w1, preferred_element_type=jnp.float32) + b1, 0.0)
        ff = jnp.dot(ff, w2, preferred_element_type=jnp.float32) + b2

        # post-norm residual 2
        h = _layer_norm(h + ff, g2, bt2)

    # ---- collapsed epilogue: mean over hidden + classifier + softmax, no B loop ----
    # logits[b,o] = sum_r sel[b,r] * rowsum(h)[r] * (wcls[r%S, o] / D) + bcls[o]
    rowsum = jnp.sum(h, axis=-1, keepdims=True)                           # (BS, 1)
    wcls_t = slab_ref[R_WCLS:R_WCLS + BS, :][:, 0:N_OUT]                  # pre-tiled & /D
    tail = slab_ref[R_TAIL:R_TAIL + 8, :]
    sel = tail[0:B, 0:BS]                                                 # (B, BS) 0/1
    bcls = tail[B:B + 1, 0:N_OUT]                                         # (1, N_OUT)
    logits = jnp.dot(sel, rowsum * wcls_t,
                     preferred_element_type=jnp.float32) + bcls           # (B, N_OUT)
    out_ref[...] = _softmax_exact(logits)                   # exact divide on final output


# ------------------------------- host-side packing ----------------------------------
def _regroup_qkv_cols(w):
    """Reorder fused [q|k|v] columns (each D wide) into per-head groups
    [q_h0|k_h0|v_h0 | q_h1|k_h1|v_h1] (each 3*HD wide). Works on (..., 3*D)."""
    groups = []
    for hh in range(NHEAD):
        for t in range(3):
            groups.append(w[..., t * D + hh * HD: t * D + (hh + 1) * HD])
    return jnp.concatenate(groups, axis=-1)


def build_slab(p):
    """Pack ALL parameters into one (SLAB_ROWS, 128) f32 slab.
    Called ONCE at init (hoisted out of the per-call path per the perf review)."""
    f32 = jnp.float32
    slab = jnp.zeros((SLAB_ROWS, SLAB_W), f32)
    for l in range(NUM_LAYERS):
        m0 = l * ROWS_PER_LAYER
        slab = slab.at[m0:m0 + D, 0:3 * D].set(_regroup_qkv_cols(p["wqkv"][l]))
        slab = slab.at[m0:m0 + D, 3 * D:4 * D].set(p["wo"][l])
        slab = slab.at[m0 + D:m0 + 2 * D, 0:DFF].set(p["w1"][l])           # pad DFF->D cols
        slab = slab.at[m0 + D:m0 + D + DFF, D:2 * D].set(p["w2"][l])       # pad DFF->D rows
        v = R_LVEC + l * 8
        slab = slab.at[v + 0:v + 1, 0:3 * D].set(_regroup_qkv_cols(p["bqkv"][l]))
        slab = slab.at[v + 1:v + 2, 0:D].set(p["bo"][l])
        slab = slab.at[v + 2:v + 3, 0:DFF].set(p["b1"][l])                 # pad DFF->D
        slab = slab.at[v + 3:v + 4, 0:D].set(p["b2"][l])
        slab = slab.at[v + 4:v + 5, 0:D].set(p["g1"][l])
        slab = slab.at[v + 5:v + 6, 0:D].set(p["bt1"][l])
        slab = slab.at[v + 6:v + 7, 0:D].set(p["g2"][l])
        slab = slab.at[v + 7:v + 8, 0:D].set(p["bt2"][l])
    slab = slab.at[R_WEMB:R_WEMB + N_IN, 0:D].set(p["wemb"])
    slab = slab.at[R_WEMB + N_IN:R_WEMB + N_IN + 1, 0:D].set(p["bemb"])
    # classifier: wcls tiled over batch blocks and pre-scaled by 1/D (hidden-mean fold)
    slab = slab.at[R_WCLS:R_WCLS + BS, 0:N_OUT].set(jnp.tile(p["wcls"], (B, 1)) / D)
    sel = (jnp.arange(BS)[None, :] // S == jnp.arange(B)[:, None]).astype(f32)
    slab = slab.at[R_TAIL:R_TAIL + B, 0:BS].set(sel)
    slab = slab.at[R_TAIL + B:R_TAIL + B + 1, 0:N_OUT].set(p["bcls"])
    return slab


@jax.jit
def transformer_forward(x, slab):
    """x: (B, S, N_IN) f32, slab: pre-packed params -> (B, N_OUT) f32. Single invocation."""
    x2d = x.reshape(BS, N_IN)                                # fold batch into rows
    vmem = pl.BlockSpec(memory_space=pltpu.MemorySpace.VMEM)
    return pl.pallas_call(
        transformer_kernel,
        out_shape=jax.ShapeDtypeStruct((B, N_OUT), jnp.float32),
        in_specs=[vmem, vmem],
        out_specs=vmem,
    )(x2d, slab)


# --------------------------- pure-JAX reference (for checking) ----------------------
def reference_forward(x, p):
    def one(xb):
        h = xb @ p["wemb"] + p["bemb"]
        for l in range(NUM_LAYERS):
            qkv = h @ p["wqkv"][l] + p["bqkv"][l]
            q, k, v = qkv[:, :D], qkv[:, D:2 * D], qkv[:, 2 * D:]
            heads = []
            for hh in range(NHEAD):
                qh = q[:, hh * HD:(hh + 1) * HD]
                kh = k[:, hh * HD:(hh + 1) * HD]
                vh = v[:, hh * HD:(hh + 1) * HD]
                s = (qh @ kh.T) / math.sqrt(HD)
                heads.append(jax.nn.softmax(s, axis=-1) @ vh)
            ctx = jnp.concatenate(heads, axis=-1)
            attn_out = ctx @ p["wo"][l] + p["bo"][l]
            h = _layer_norm(h + attn_out, p["g1"][l], p["bt1"][l])
            ff = jnp.maximum(h @ p["w1"][l] + p["b1"][l], 0.0) @ p["w2"][l] + p["b2"][l]
            h = _layer_norm(h + ff, p["g2"][l], p["bt2"][l])
        pooled = jnp.mean(h, axis=-1)                               # (S,)
        logits = pooled @ p["wcls"] + p["bcls"][0]
        return jax.nn.softmax(logits, axis=-1)
    return jax.vmap(one)(x)


# --------------------------- deterministic param init -------------------------------
def make_params(key):
    ks = jax.random.split(key, 20)
    n = lambda k, shape, s=0.1: (s * jax.random.normal(k, shape, jnp.float32))
    L = NUM_LAYERS
    return {
        # embeddings Linear(n_in, n_hidden) — stored pre-transposed as (n_in, d)
        "wemb": n(ks[0], (N_IN, D)),
        "bemb": n(ks[1], (1, D)),
        # per-layer attention: in_proj (d, 3d) [q|k|v columns], out_proj (d, d)
        "wqkv": n(ks[2], (L, D, 3 * D)),
        "bqkv": n(ks[3], (L, 1, 3 * D)),
        "wo":   n(ks[4], (L, D, D)),
        "bo":   n(ks[5], (L, 1, D)),
        # layer norms
        "g1":  jnp.ones((L, 1, D), jnp.float32),
        "bt1": jnp.zeros((L, 1, D), jnp.float32),
        "g2":  jnp.ones((L, 1, D), jnp.float32),
        "bt2": jnp.zeros((L, 1, D), jnp.float32),
        # feed-forward
        "w1": n(ks[6], (L, D, DFF)),
        "b1": n(ks[7], (L, 1, DFF)),
        "w2": n(ks[8], (L, DFF, D)),
        "b2": n(ks[9], (L, 1, D)),
        # classifier Linear(seq, n_out) — stored pre-transposed as (S, n_out)
        "wcls": n(ks[10], (S, N_OUT)),
        "bcls": n(ks[11], (1, N_OUT)),
    }


if __name__ == "__main__":
    key = jax.random.PRNGKey(0)
    k_param, k_x = jax.random.split(key)
    params = make_params(k_param)
    x = jax.random.normal(k_x, (B, S, N_IN), jnp.float32)

    # pack once at init (NOT per call)
    slab = jax.block_until_ready(build_slab(params))

    out = jax.block_until_ready(transformer_forward(x, slab))
    ref = jax.block_until_ready(reference_forward(x, params))

    assert out.shape == (B, N_OUT)
    # tolerance slightly loose: attention-softmax denominator uses EUP approx reciprocal
    assert jnp.allclose(out, ref, rtol=1e-3, atol=1e-4), (out, ref)

    print("KERNEL_OK")
</pallas_src>

<mosaic_0001>
module attributes {stable_mosaic.version = 11 : i64} {
  func.func @transformer_kernel(%arg0: memref<16x4xf32, #tpu.memory_space<vmem>>, %arg1: memref<176x128xf32, #tpu.memory_space<vmem>>, %arg2: memref<2x4xf32, #tpu.memory_space<vmem>>) attributes {dimension_semantics = [], scalar_prefetch = 0 : i64, scratch_operands = 0 : i64, tpu.core_type = #tpu.core_type<tc>} {
    %c0 = arith.constant 0 : index
    %c0_0 = arith.constant 0 : index
    %0 = vector.load %arg0[%c0, %c0_0] : memref<16x4xf32, #tpu.memory_space<vmem>>, vector<16x4xf32>
    %c128 = arith.constant 128 : index
    %c0_1 = arith.constant 0 : index
    %1 = vector.load %arg1[%c128, %c0_1] : memref<176x128xf32, #tpu.memory_space<vmem>>, vector<8x128xf32>
    %2 = vector.extract_strided_slice %1 {offsets = [0, 0], sizes = [4, 32], strides = [1, 1]} : vector<8x128xf32> to vector<4x32xf32>
    %3 = vector.extract_strided_slice %1 {offsets = [4, 0], sizes = [1, 32], strides = [1, 1]} : vector<8x128xf32> to vector<1x32xf32>
    %cst = arith.constant dense<0.000000e+00> : vector<16x32xf32>
    %4 = tpu.matmul %0, %2, %cst {dimension_numbers = #tpu.dot_dimension_numbers<[1], [0], [0], [1], [0, 0, 1, 1], [], []>} : vector<16x4xf32>, vector<4x32xf32>, vector<16x32xf32> -> vector<16x32xf32>
    %5 = vector.broadcast %3 : vector<1x32xf32> to vector<16x32xf32>
    %6 = arith.addf %4, %5 : vector<16x32xf32>
    %7 = tpu.iota {dimensions = array<i32: 0>} : vector<32x32xi32>
    %8 = tpu.iota {dimensions = array<i32: 1>} : vector<32x32xi32>
    %9 = arith.xori %7, %8 : vector<32x32xi32>
    %c8_i32 = arith.constant 8 : i32
    %10 = vector.broadcast %c8_i32 : i32 to vector<32x32xi32>
    %11 = arith.cmpi slt, %9, %10 : vector<32x32xi32>
    %cst_2 = arith.constant 0.000000e+00 : f32
    %cst_3 = arith.constant -1.000000e+30 : f32
    %12 = vector.broadcast %cst_2 : f32 to vector<32x32xf32>
    %13 = vector.broadcast %cst_3 : f32 to vector<32x32xf32>
    %14 = arith.select %11, %12, %13 : vector<32x32xi1>, vector<32x32xf32>
    %c0_4 = arith.constant 0 : index
    %c0_5 = arith.constant 0 : index
    %15 = vector.load %arg1[%c0_4, %c0_5] : memref<176x128xf32, #tpu.memory_space<vmem>>, vector<32x128xf32>
    %c32 = arith.constant 32 : index
    %c0_6 = arith.constant 0 : index
    %16 = vector.load %arg1[%c32, %c0_6] : memref<176x128xf32, #tpu.memory_space<vmem>>, vector<32x128xf32>
    %c136 = arith.constant 136 : index
    %c0_7 = arith.constant 0 : index
    %17 = vector.load %arg1[%c136, %c0_7] : memref<176x128xf32, #tpu.memory_space<vmem>>, vector<8x128xf32>
    %18 = vector.extract_strided_slice %15 {offsets = [0, 0], sizes = [32, 96], strides = [1, 1]} : vector<32x128xf32> to vector<32x96xf32>
    %19 = vector.extract_strided_slice %16 {offsets = [0, 0], sizes = [32, 32], strides = [1, 1]} : vector<32x128xf32> to vector<32x32xf32>
    %20 = vector.extract_strided_slice %16 {offsets = [0, 32], sizes = [32, 32], strides = [1, 1]} : vector<32x128xf32> to vector<32x32xf32>
    %21 = vector.extract_strided_slice %17 {offsets = [0, 0], sizes = [1, 96], strides = [1, 1]} : vector<8x128xf32> to vector<1x96xf32>
    %22 = vector.extract_strided_slice %17 {offsets = [1, 0], sizes = [1, 32], strides = [1, 1]} : vector<8x128xf32> to vector<1x32xf32>
    %23 = vector.extract_strided_slice %17 {offsets = [2, 0], sizes = [1, 32], strides = [1, 1]} : vector<8x128xf32> to vector<1x32xf32>
    %24 = vector.extract_strided_slice %17 {offsets = [3, 0], sizes = [1, 32], strides = [1, 1]} : vector<8x128xf32> to vector<1x32xf32>
    %25 = vector.extract_strided_slice %17 {offsets = [4, 0], sizes = [1, 32], strides = [1, 1]} : vector<8x128xf32> to vector<1x32xf32>
    %26 = vector.extract_strided_slice %17 {offsets = [5, 0], sizes = [1, 32], strides = [1, 1]} : vector<8x128xf32> to vector<1x32xf32>
    %27 = vector.extract_strided_slice %17 {offsets = [6, 0], sizes = [1, 32], strides = [1, 1]} : vector<8x128xf32> to vector<1x32xf32>
    %28 = vector.extract_strided_slice %17 {offsets = [7, 0], sizes = [1, 32], strides = [1, 1]} : vector<8x128xf32> to vector<1x32xf32>
    %cst_8 = arith.constant dense<0.000000e+00> : vector<16x96xf32>
    %29 = tpu.matmul %6, %18, %cst_8 {dimension_numbers = #tpu.dot_dimension_numbers<[1], [0], [0], [1], [0, 0, 1, 1], [], []>} : vector<16x32xf32>, vector<32x96xf32>, vector<16x96xf32> -> vector<16x96xf32>
    %30 = vector.broadcast %21 : vector<1x96xf32> to vector<16x96xf32>
    %31 = arith.addf %29, %30 : vector<16x96xf32>
    %32 = vector.extract_strided_slice %31 {offsets = [0, 0], sizes = [16, 48], strides = [1, 1]} : vector<16x96xf32> to vector<16x48xf32>
    %33 = vector.extract_strided_slice %31 {offsets = [0, 48], sizes = [16, 48], strides = [1, 1]} : vector<16x96xf32> to vector<16x48xf32>
    %34 = tpu.concatenate %32, %33 in 0 : vector<16x48xf32>, vector<16x48xf32> -> vector<32x48xf32>
    %35 = vector.extract_strided_slice %34 {offsets = [0, 0], sizes = [32, 16], strides = [1, 1]} : vector<32x48xf32> to vector<32x16xf32>
    %36 = vector.extract_strided_slice %34 {offsets = [0, 16], sizes = [32, 16], strides = [1, 1]} : vector<32x48xf32> to vector<32x16xf32>
    %37 = vector.extract_strided_slice %34 {offsets = [0, 32], sizes = [32, 16], strides = [1, 1]} : vector<32x48xf32> to vector<32x16xf32>
    %cst_9 = arith.constant dense<0.000000e+00> : vector<32x32xf32>
    %38 = tpu.matmul %35, %36, %cst_9 {dimension_numbers = #tpu.dot_dimension_numbers<[1], [1], [0], [0], [0, 0, 1, 0], [], []>} : vector<32x16xf32>, vector<32x16xf32>, vector<32x32xf32> -> vector<32x32xf32>
    %cst_10 = arith.constant 2.500000e-01 : f32
    %39 = vector.broadcast %cst_10 : f32 to vector<32x32xf32>
    %40 = arith.mulf %38, %39 : vector<32x32xf32>
    %41 = arith.addf %40, %14 : vector<32x32xf32>
    %cst_11 = arith.constant dense<0xFF800000> : vector<32xf32>
    %42 = vector.multi_reduction <maximumf>, %41, %cst_11 [1] : vector<32x32xf32> to vector<32xf32>
    %43 = vector.shape_cast %42 : vector<32xf32> to vector<32x1xf32>
    %44 = vector.broadcast %43 : vector<32x1xf32> to vector<32x32xf32>
    %45 = arith.subf %41, %44 : vector<32x32xf32>
    %46 = math.exp %45 : vector<32x32xf32>
    %cst_12 = arith.constant dense<0.000000e+00> : vector<32xf32>
    %47 = vector.multi_reduction <add>, %46, %cst_12 [1] : vector<32x32xf32> to vector<32xf32>
    %48 = vector.shape_cast %47 : vector<32xf32> to vector<32x1xf32>
    %49 = tpu.reciprocal %48 {approx = true} : vector<32x1xf32> -> vector<32x1xf32>
    %50 = vector.broadcast %49 : vector<32x1xf32> to vector<32x32xf32>
    %51 = arith.mulf %46, %50 : vector<32x32xf32>
    %cst_13 = arith.constant dense<0.000000e+00> : vector<32x16xf32>
    %52 = tpu.matmul %51, %37, %cst_13 {dimension_numbers = #tpu.dot_dimension_numbers<[1], [0], [0], [1], [0, 0, 1, 1], [], []>} : vector<32x32xf32>, vector<32x16xf32>, vector<32x16xf32> -> vector<32x16xf32>
    %53 = vector.extract_strided_slice %52 {offsets = [0, 0], sizes = [16, 16], strides = [1, 1]} : vector<32x16xf32> to vector<16x16xf32>
    %54 = vector.extract_strided_slice %15 {offsets = [0, 96], sizes = [16, 32], strides = [1, 1]} : vector<32x128xf32> to vector<16x32xf32>
    %cst_14 = arith.constant dense<0.000000e+00> : vector<16x32xf32>
    %55 = tpu.matmul %53, %54, %cst_14 {dimension_numbers = #tpu.dot_dimension_numbers<[1], [0], [0], [1], [0, 0, 1, 1], [], []>} : vector<16x16xf32>, vector<16x32xf32>, vector<16x32xf32> -> vector<16x32xf32>
    %56 = vector.broadcast %22 : vector<1x32xf32> to vector<16x32xf32>
    %57 = arith.addf %56, %55 : vector<16x32xf32>
    %58 = vector.extract_strided_slice %52 {offsets = [16, 0], sizes = [16, 16], strides = [1, 1]} : vector<32x16xf32> to vector<16x16xf32>
    %59 = vector.extract_strided_slice %15 {offsets = [16, 96], sizes = [16, 32], strides = [1, 1]} : vector<32x128xf32> to vector<16x32xf32>
    %cst_15 = arith.constant dense<0.000000e+00> : vector<16x32xf32>
    %60 = tpu.matmul %58, %59, %cst_15 {dimension_numbers = #tpu.dot_dimension_numbers<[1], [0], [0], [1], [0, 0, 1, 1], [], []>} : vector<16x16xf32>, vector<16x32xf32>, vector<16x32xf32> -> vector<16x32xf32>
    %61 = arith.addf %57, %60 : vector<16x32xf32>
    %62 = arith.addf %6, %61 : vector<16x32xf32>
    %cst_16 = arith.constant dense<0.000000e+00> : vector<16xf32>
    %63 = vector.multi_reduction <add>, %62, %cst_16 [1] : vector<16x32xf32> to vector<16xf32>
    %64 = vector.shape_cast %63 : vector<16xf32> to vector<16x1xf32>
    %cst_17 = arith.constant 3.200000e+01 : f32
    %65 = vector.broadcast %cst_17 : f32 to vector<16x1xf32>
    %66 = arith.divf %64, %65 : vector<16x1xf32>
    %67 = vector.broadcast %66 : vector<16x1xf32> to vector<16x32xf32>
    %68 = arith.subf %62, %67 : vector<16x32xf32>
    %69 = arith.mulf %68, %68 : vector<16x32xf32>
    %cst_18 = arith.constant dense<0.000000e+00> : vector<16xf32>
    %70 = vector.multi_reduction <add>, %69, %cst_18 [1] : vector<16x32xf32> to vector<16xf32>
    %71 = vector.shape_cast %70 : vector<16xf32> to vector<16x1xf32>
    %cst_19 = arith.constant 3.200000e+01 : f32
    %72 = vector.broadcast %cst_19 : f32 to vector<16x1xf32>
    %73 = arith.divf %71, %72 : vector<16x1xf32>
    %74 = vector.broadcast %66 : vector<16x1xf32> to vector<16x32xf32>
    %75 = arith.subf %62, %74 : vector<16x32xf32>
    %cst_20 = arith.constant 9.99999974E-6 : f32
    %76 = vector.broadcast %cst_20 : f32 to vector<16x1xf32>
    %77 = arith.addf %73, %76 : vector<16x1xf32>
    %78 = math.rsqrt %77 : vector<16x1xf32>
    %79 = vector.broadcast %78 : vector<16x1xf32> to vector<16x32xf32>
    %80 = arith.mulf %75, %79 : vector<16x32xf32>
    %81 = vector.broadcast %25 : vector<1x32xf32> to vector<16x32xf32>
    %82 = arith.mulf %80, %81 : vector<16x32xf32>
    %83 = vector.broadcast %26 : vector<1x32xf32> to vector<16x32xf32>
    %84 = arith.addf %82, %83 : vector<16x32xf32>
    %cst_21 = arith.constant dense<0.000000e+00> : vector<16x32xf32>
    %85 = tpu.matmul %84, %19, %cst_21 {dimension_numbers = #tpu.dot_dimension_numbers<[1], [0], [0], [1], [0, 0, 1, 1], [], []>} : vector<16x32xf32>, vector<32x32xf32>, vector<16x32xf32> -> vector<16x32xf32>
    %86 = vector.broadcast %23 : vector<1x32xf32> to vector<16x32xf32>
    %87 = arith.addf %85, %86 : vector<16x32xf32>
    %cst_22 = arith.constant 0.000000e+00 : f32
    %88 = vector.broadcast %cst_22 : f32 to vector<16x32xf32>
    %89 = arith.maximumf %87, %88 : vector<16x32xf32>
    %cst_23 = arith.constant dense<0.000000e+00> : vector<16x32xf32>
    %90 = tpu.matmul %89, %20, %cst_23 {dimension_numbers = #tpu.dot_dimension_numbers<[1], [0], [0], [1], [0, 0, 1, 1], [], []>} : vector<16x32xf32>, vector<32x32xf32>, vector<16x32xf32> -> vector<16x32xf32>
    %91 = vector.broadcast %24 : vector<1x32xf32> to vector<16x32xf32>
    %92 = arith.addf %90, %91 : vector<16x32xf32>
    %93 = arith.addf %84, %92 : vector<16x32xf32>
    %cst_24 = arith.constant dense<0.000000e+00> : vector<16xf32>
    %94 = vector.multi_reduction <add>, %93, %cst_24 [1] : vector<16x32xf32> to vector<16xf32>
    %95 = vector.shape_cast %94 : vector<16xf32> to vector<16x1xf32>
    %cst_25 = arith.constant 3.200000e+01 : f32
    %96 = vector.broadcast %cst_25 : f32 to vector<16x1xf32>
    %97 = arith.divf %95, %96 : vector<16x1xf32>
    %98 = vector.broadcast %97 : vector<16x1xf32> to vector<16x32xf32>
    %99 = arith.subf %93, %98 : vector<16x32xf32>
    %100 = arith.mulf %99, %99 : vector<16x32xf32>
    %cst_26 = arith.constant dense<0.000000e+00> : vector<16xf32>
    %101 = vector.multi_reduction <add>, %100, %cst_26 [1] : vector<16x32xf32> to vector<16xf32>
    %102 = vector.shape_cast %101 : vector<16xf32> to vector<16x1xf32>
    %cst_27 = arith.constant 3.200000e+01 : f32
    %103 = vector.broadcast %cst_27 : f32 to vector<16x1xf32>
    %104 = arith.divf %102, %103 : vector<16x1xf32>
    %105 = vector.broadcast %97 : vector<16x1xf32> to vector<16x32xf32>
    %106 = arith.subf %93, %105 : vector<16x32xf32>
    %cst_28 = arith.constant 9.99999974E-6 : f32
    %107 = vector.broadcast %cst_28 : f32 to vector<16x1xf32>
    %108 = arith.addf %104, %107 : vector<16x1xf32>
    %109 = math.rsqrt %108 : vector<16x1xf32>
    %110 = vector.broadcast %109 : vector<16x1xf32> to vector<16x32xf32>
    %111 = arith.mulf %106, %110 : vector<16x32xf32>
    %112 = vector.broadcast %27 : vector<1x32xf32> to vector<16x32xf32>
    %113 = arith.mulf %111, %112 : vector<16x32xf32>
    %114 = vector.broadcast %28 : vector<1x32xf32> to vector<16x32xf32>
    %115 = arith.addf %113, %114 : vector<16x32xf32>
    %c64 = arith.constant 64 : index
    %c0_29 = arith.constant 0 : index
    %116 = vector.load %arg1[%c64, %c0_29] : memref<176x128xf32, #tpu.memory_space<vmem>>, vector<32x128xf32>
    %c96 = arith.constant 96 : index
    %c0_30 = arith.constant 0 : index
    %117 = vector.load %arg1[%c96, %c0_30] : memref<176x128xf32, #tpu.memory_space<vmem>>, vector<32x128xf32>
    %c144 = arith.constant 144 : index
    %c0_31 = arith.constant 0 : index
    %118 = vector.load %arg1[%c144, %c0_31] : memref<176x128xf32, #tpu.memory_space<vmem>>, vector<8x128xf32>
    %119 = vector.extract_strided_slice %116 {offsets = [0, 0], sizes = [32, 96], strides = [1, 1]} : vector<32x128xf32> to vector<32x96xf32>
    %120 = vector.extract_strided_slice %117 {offsets = [0, 0], sizes = [32, 32], strides = [1, 1]} : vector<32x128xf32> to vector<32x32xf32>
    %121 = vector.extract_strided_slice %117 {offsets = [0, 32], sizes = [32, 32], strides = [1, 1]} : vector<32x128xf32> to vector<32x32xf32>
    %122 = vector.extract_strided_slice %118 {offsets = [0, 0], sizes = [1, 96], strides = [1, 1]} : vector<8x128xf32> to vector<1x96xf32>
    %123 = vector.extract_strided_slice %118 {offsets = [1, 0], sizes = [1, 32], strides = [1, 1]} : vector<8x128xf32> to vector<1x32xf32>
    %124 = vector.extract_strided_slice %118 {offsets = [2, 0], sizes = [1, 32], strides = [1, 1]} : vector<8x128xf32> to vector<1x32xf32>
    %125 = vector.extract_strided_slice %118 {offsets = [3, 0], sizes = [1, 32], strides = [1, 1]} : vector<8x128xf32> to vector<1x32xf32>
    %126 = vector.extract_strided_slice %118 {offsets = [4, 0], sizes = [1, 32], strides = [1, 1]} : vector<8x128xf32> to vector<1x32xf32>
    %127 = vector.extract_strided_slice %118 {offsets = [5, 0], sizes = [1, 32], strides = [1, 1]} : vector<8x128xf32> to vector<1x32xf32>
    %128 = vector.extract_strided_slice %118 {offsets = [6, 0], sizes = [1, 32], strides = [1, 1]} : vector<8x128xf32> to vector<1x32xf32>
    %129 = vector.extract_strided_slice %118 {offsets = [7, 0], sizes = [1, 32], strides = [1, 1]} : vector<8x128xf32> to vector<1x32xf32>
    %cst_32 = arith.constant dense<0.000000e+00> : vector<16x96xf32>
    %130 = tpu.matmul %115, %119, %cst_32 {dimension_numbers = #tpu.dot_dimension_numbers<[1], [0], [0], [1], [0, 0, 1, 1], [], []>} : vector<16x32xf32>, vector<32x96xf32>, vector<16x96xf32> -> vector<16x96xf32>
    %131 = vector.broadcast %122 : vector<1x96xf32> to vector<16x96xf32>
    %132 = arith.addf %130, %131 : vector<16x96xf32>
    %133 = vector.extract_strided_slice %132 {offsets = [0, 0], sizes = [16, 48], strides = [1, 1]} : vector<16x96xf32> to vector<16x48xf32>
    %134 = vector.extract_strided_slice %132 {offsets = [0, 48], sizes = [16, 48], strides = [1, 1]} : vector<16x96xf32> to vector<16x48xf32>
    %135 = tpu.concatenate %133, %134 in 0 : vector<16x48xf32>, vector<16x48xf32> -> vector<32x48xf32>
    %136 = vector.extract_strided_slice %135 {offsets = [0, 0], sizes = [32, 16], strides = [1, 1]} : vector<32x48xf32> to vector<32x16xf32>
    %137 = vector.extract_strided_slice %135 {offsets = [0, 16], sizes = [32, 16], strides = [1, 1]} : vector<32x48xf32> to vector<32x16xf32>
    %138 = vector.extract_strided_slice %135 {offsets = [0, 32], sizes = [32, 16], strides = [1, 1]} : vector<32x48xf32> to vector<32x16xf32>
    %cst_33 = arith.constant dense<0.000000e+00> : vector<32x32xf32>
    %139 = tpu.matmul %136, %137, %cst_33 {dimension_numbers = #tpu.dot_dimension_numbers<[1], [1], [0], [0], [0, 0, 1, 0], [], []>} : vector<32x16xf32>, vector<32x16xf32>, vector<32x32xf32> -> vector<32x32xf32>
    %cst_34 = arith.constant 2.500000e-01 : f32
    %140 = vector.broadcast %cst_34 : f32 to vector<32x32xf32>
    %141 = arith.mulf %139, %140 : vector<32x32xf32>
    %142 = arith.addf %141, %14 : vector<32x32xf32>
    %cst_35 = arith.constant dense<0xFF800000> : vector<32xf32>
    %143 = vector.multi_reduction <maximumf>, %142, %cst_35 [1] : vector<32x32xf32> to vector<32xf32>
    %144 = vector.shape_cast %143 : vector<32xf32> to vector<32x1xf32>
    %145 = vector.broadcast %144 : vector<32x1xf32> to vector<32x32xf32>
    %146 = arith.subf %142, %145 : vector<32x32xf32>
    %147 = math.exp %146 : vector<32x32xf32>
    %cst_36 = arith.constant dense<0.000000e+00> : vector<32xf32>
    %148 = vector.multi_reduction <add>, %147, %cst_36 [1] : vector<32x32xf32> to vector<32xf32>
    %149 = vector.shape_cast %148 : vector<32xf32> to vector<32x1xf32>
    %150 = tpu.reciprocal %149 {approx = true} : vector<32x1xf32> -> vector<32x1xf32>
    %151 = vector.broadcast %150 : vector<32x1xf32> to vector<32x32xf32>
    %152 = arith.mulf %147, %151 : vector<32x32xf32>
    %cst_37 = arith.constant dense<0.000000e+00> : vector<32x16xf32>
    %153 = tpu.matmul %152, %138, %cst_37 {dimension_numbers = #tpu.dot_dimension_numbers<[1], [0], [0], [1], [0, 0, 1, 1], [], []>} : vector<32x32xf32>, vector<32x16xf32>, vector<32x16xf32> -> vector<32x16xf32>
    %154 = vector.extract_strided_slice %153 {offsets = [0, 0], sizes = [16, 16], strides = [1, 1]} : vector<32x16xf32> to vector<16x16xf32>
    %155 = vector.extract_strided_slice %116 {offsets = [0, 96], sizes = [16, 32], strides = [1, 1]} : vector<32x128xf32> to vector<16x32xf32>
    %cst_38 = arith.constant dense<0.000000e+00> : vector<16x32xf32>
    %156 = tpu.matmul %154, %155, %cst_38 {dimension_numbers = #tpu.dot_dimension_numbers<[1], [0], [0], [1], [0, 0, 1, 1], [], []>} : vector<16x16xf32>, vector<16x32xf32>, vector<16x32xf32> -> vector<16x32xf32>
    %157 = vector.broadcast %123 : vector<1x32xf32> to vector<16x32xf32>
    %158 = arith.addf %157, %156 : vector<16x32xf32>
    %159 = vector.extract_strided_slice %153 {offsets = [16, 0], sizes = [16, 16], strides = [1, 1]} : vector<32x16xf32> to vector<16x16xf32>
    %160 = vector.extract_strided_slice %116 {offsets = [16, 96], sizes = [16, 32], strides = [1, 1]} : vector<32x128xf32> to vector<16x32xf32>
    %cst_39 = arith.constant dense<0.000000e+00> : vector<16x32xf32>
    %161 = tpu.matmul %159, %160, %cst_39 {dimension_numbers = #tpu.dot_dimension_numbers<[1], [0], [0], [1], [0, 0, 1, 1], [], []>} : vector<16x16xf32>, vector<16x32xf32>, vector<16x32xf32> -> vector<16x32xf32>
    %162 = arith.addf %158, %161 : vector<16x32xf32>
    %163 = arith.addf %115, %162 : vector<16x32xf32>
    %cst_40 = arith.constant dense<0.000000e+00> : vector<16xf32>
    %164 = vector.multi_reduction <add>, %163, %cst_40 [1] : vector<16x32xf32> to vector<16xf32>
    %165 = vector.shape_cast %164 : vector<16xf32> to vector<16x1xf32>
    %cst_41 = arith.constant 3.200000e+01 : f32
    %166 = vector.broadcast %cst_41 : f32 to vector<16x1xf32>
    %167 = arith.divf %165, %166 : vector<16x1xf32>
    %168 = vector.broadcast %167 : vector<16x1xf32> to vector<16x32xf32>
    %169 = arith.subf %163, %168 : vector<16x32xf32>
    %170 = arith.mulf %169, %169 : vector<16x32xf32>
    %cst_42 = arith.constant dense<0.000000e+00> : vector<16xf32>
    %171 = vector.multi_reduction <add>, %170, %cst_42 [1] : vector<16x32xf32> to vector<16xf32>
    %172 = vector.shape_cast %171 : vector<16xf32> to vector<16x1xf32>
    %cst_43 = arith.constant 3.200000e+01 : f32
    %173 = vector.broadcast %cst_43 : f32 to vector<16x1xf32>
    %174 = arith.divf %172, %173 : vector<16x1xf32>
    %175 = vector.broadcast %167 : vector<16x1xf32> to vector<16x32xf32>
    %176 = arith.subf %163, %175 : vector<16x32xf32>
    %cst_44 = arith.constant 9.99999974E-6 : f32
    %177 = vector.broadcast %cst_44 : f32 to vector<16x1xf32>
    %178 = arith.addf %174, %177 : vector<16x1xf32>
    %179 = math.rsqrt %178 : vector<16x1xf32>
    %180 = vector.broadcast %179 : vector<16x1xf32> to vector<16x32xf32>
    %181 = arith.mulf %176, %180 : vector<16x32xf32>
    %182 = vector.broadcast %126 : vector<1x32xf32> to vector<16x32xf32>
    %183 = arith.mulf %181, %182 : vector<16x32xf32>
    %184 = vector.broadcast %127 : vector<1x32xf32> to vector<16x32xf32>
    %185 = arith.addf %183, %184 : vector<16x32xf32>
    %cst_45 = arith.constant dense<0.000000e+00> : vector<16x32xf32>
    %186 = tpu.matmul %185, %120, %cst_45 {dimension_numbers = #tpu.dot_dimension_numbers<[1], [0], [0], [1], [0, 0, 1, 1], [], []>} : vector<16x32xf32>, vector<32x32xf32>, vector<16x32xf32> -> vector<16x32xf32>
    %187 = vector.broadcast %124 : vector<1x32xf32> to vector<16x32xf32>
    %188 = arith.addf %186, %187 : vector<16x32xf32>
    %cst_46 = arith.constant 0.000000e+00 : f32
    %189 = vector.broadcast %cst_46 : f32 to vector<16x32xf32>
    %190 = arith.maximumf %188, %189 : vector<16x32xf32>
    %cst_47 = arith.constant dense<0.000000e+00> : vector<16x32xf32>
    %191 = tpu.matmul %190, %121, %cst_47 {dimension_numbers = #tpu.dot_dimension_numbers<[1], [0], [0], [1], [0, 0, 1, 1], [], []>} : vector<16x32xf32>, vector<32x32xf32>, vector<16x32xf32> -> vector<16x32xf32>
    %192 = vector.broadcast %125 : vector<1x32xf32> to vector<16x32xf32>
    %193 = arith.addf %191, %192 : vector<16x32xf32>
    %194 = arith.addf %185, %193 : vector<16x32xf32>
    %cst_48 = arith.constant dense<0.000000e+00> : vector<16xf32>
    %195 = vector.multi_reduction <add>, %194, %cst_48 [1] : vector<16x32xf32> to vector<16xf32>
    %196 = vector.shape_cast %195 : vector<16xf32> to vector<16x1xf32>
    %cst_49 = arith.constant 3.200000e+01 : f32
    %197 = vector.broadcast %cst_49 : f32 to vector<16x1xf32>
    %198 = arith.divf %196, %197 : vector<16x1xf32>
    %199 = vector.broadcast %198 : vector<16x1xf32> to vector<16x32xf32>
    %200 = arith.subf %194, %199 : vector<16x32xf32>
    %201 = arith.mulf %200, %200 : vector<16x32xf32>
    %cst_50 = arith.constant dense<0.000000e+00> : vector<16xf32>
    %202 = vector.multi_reduction <add>, %201, %cst_50 [1] : vector<16x32xf32> to vector<16xf32>
    %203 = vector.shape_cast %202 : vector<16xf32> to vector<16x1xf32>
    %cst_51 = arith.constant 3.200000e+01 : f32
    %204 = vector.broadcast %cst_51 : f32 to vector<16x1xf32>
    %205 = arith.divf %203, %204 : vector<16x1xf32>
    %206 = vector.broadcast %198 : vector<16x1xf32> to vector<16x32xf32>
    %207 = arith.subf %194, %206 : vector<16x32xf32>
    %cst_52 = arith.constant 9.99999974E-6 : f32
    %208 = vector.broadcast %cst_52 : f32 to vector<16x1xf32>
    %209 = arith.addf %205, %208 : vector<16x1xf32>
    %210 = math.rsqrt %209 : vector<16x1xf32>
    %211 = vector.broadcast %210 : vector<16x1xf32> to vector<16x32xf32>
    %212 = arith.mulf %207, %211 : vector<16x32xf32>
    %213 = vector.broadcast %128 : vector<1x32xf32> to vector<16x32xf32>
    %214 = arith.mulf %212, %213 : vector<16x32xf32>
    %215 = vector.broadcast %129 : vector<1x32xf32> to vector<16x32xf32>
    %216 = arith.addf %214, %215 : vector<16x32xf32>
    %cst_53 = arith.constant dense<0.000000e+00> : vector<16xf32>
    %217 = vector.multi_reduction <add>, %216, %cst_53 [1] : vector<16x32xf32> to vector<16xf32>
    %218 = vector.shape_cast %217 : vector<16xf32> to vector<16x1xf32>
    %c152 = arith.constant 152 : index
    %c0_54 = arith.constant 0 : index
    %219 = vector.load %arg1[%c152, %c0_54] : memref<176x128xf32, #tpu.memory_space<vmem>>, vector<16x128xf32>
    %220 = vector.extract_strided_slice %219 {offsets = [0, 0], sizes = [16, 4], strides = [1, 1]} : vector<16x128xf32> to vector<16x4xf32>
    %c168 = arith.constant 168 : index
    %c0_55 = arith.constant 0 : index
    %221 = vector.load %arg1[%c168, %c0_55] : memref<176x128xf32, #tpu.memory_space<vmem>>, vector<8x128xf32>
    %222 = vector.extract_strided_slice %221 {offsets = [0, 0], sizes = [2, 16], strides = [1, 1]} : vector<8x128xf32> to vector<2x16xf32>
    %223 = vector.extract_strided_slice %221 {offsets = [2, 0], sizes = [1, 4], strides = [1, 1]} : vector<8x128xf32> to vector<1x4xf32>
    %224 = vector.broadcast %218 : vector<16x1xf32> to vector<16x4xf32>
    %225 = arith.mulf %224, %220 : vector<16x4xf32>
    %cst_56 = arith.constant dense<0.000000e+00> : vector<2x4xf32>
    %226 = tpu.matmul %222, %225, %cst_56 {dimension_numbers = #tpu.dot_dimension_numbers<[1], [0], [0], [1], [0, 0, 1, 1], [], []>} : vector<2x16xf32>, vector<16x4xf32>, vector<2x4xf32> -> vector<2x4xf32>
    %227 = vector.broadcast %223 : vector<1x4xf32> to vector<2x4xf32>
    %228 = arith.addf %226, %227 : vector<2x4xf32>
    %cst_57 = arith.constant dense<0xFF800000> : vector<2xf32>
    %229 = vector.multi_reduction <maximumf>, %228, %cst_57 [1] : vector<2x4xf32> to vector<2xf32>
    %230 = vector.shape_cast %229 : vector<2xf32> to vector<2x1xf32>
    %231 = vector.broadcast %230 : vector<2x1xf32> to vector<2x4xf32>
    %232 = arith.subf %228, %231 : vector<2x4xf32>
    %233 = math.exp %232 : vector<2x4xf32>
    %cst_58 = arith.constant dense<0.000000e+00> : vector<2xf32>
    %234 = vector.multi_reduction <add>, %233, %cst_58 [1] : vector<2x4xf32> to vector<2xf32>
    %235 = vector.shape_cast %234 : vector<2xf32> to vector<2x1xf32>
    %236 = vector.broadcast %235 : vector<2x1xf32> to vector<2x4xf32>
    %237 = arith.divf %233, %236 : vector<2x4xf32>
    %c0_59 = arith.constant 0 : index
    %c0_60 = arith.constant 0 : index
    %238 = vector.load %arg2[%c0_59, %c0_60] : memref<2x4xf32, #tpu.memory_space<vmem>>, vector<2x4xf32>
    tpu.vector_store %arg2[%c0_59, %c0_60], %237 {strides = array<i32>} : memref<2x4xf32, #tpu.memory_space<vmem>>, vector<2x4xf32>,
    return
  }
}

</mosaic_0001>

<bundles_post_ra>
// kernel: transformer_forward.1
= control target key start
LH: loop header
LB: loop body
LE: loop exit
PB: predicated region body
PF: predicated region fallthrough
CT: control target
= control target key end

     0   :  { %7 = vsyncpa [#allocation3], 0  ;;  %s2650_s0 = inlined_call_operand.vmem [shape: f32[16,4], index: 0, kind: input, shape index: {}]   ;;  %s2651_s1 = inlined_call_operand.hbm [shape: f32[176,128], index: 1, kind: input, shape index: {}]   ;;  %s2652_s2 = inlined_call_operand.hbm [shape: f32[2,4], index: 2, kind: output, shape index: {}]  }
   0x1   :  { %8 = vsyncpa [#allocation4], 0  ;;  %s2312_s9 = smov [#allocation2]  }
   0x2   :  { %s16_s10 = sshll.u32 %s2312_s9, 4  ;;  %s17_s10 = int_to_ptr.vmem [resolvable:$true] %s16_s10 }
   0x3   :  { %s2276_s11 = scalar_lea.vmem %s17_s10, 2816  ;;  %p2281_p1 = scmp.lt.s32.totalorder %s17_s10, %s17_s10 }
   0x4   :  { %p2277_p0 = scmp.ne.s32.totalorder %s17_s10, %s2276_s11  ;;  %p2282_p2 = scmp.lt.s32.totalorder %s2276_s11, %s2276_s11 }
   0x6   :  { %p2283_p3 = por %p2282_p2, %p2281_p1 }
   0x8   :  { %p2284_p4 = pnand %p2283_p3, %p2277_p0 }
   0xa   :  { %2287 = shalt.err (!%p2284_p4)
}
   0xb   :  { %s2313_s12 = smov 128   ;;  %s2314_s13 = smov 8  }
   0xc   :  { %22 = dma.hbm_to_vmem [thread:$0]  %s2651_s1, 2816, %s17_s10, [#allocation3], %s2313_s12, %s2313_s12, %s2314_s13  }
   0xd   :  { %2308 = dma.done.wait [#allocation3], 2816  }
   0xe   :  { %2309 = vsyncadd [#allocation3], 4294964480  ;;  %vm40_vm0 = vcmask 1043456   ;;  %vm33_vm1 = vcmask 31744   ;;  %v28_v0 = vld [vmem:[#allocation2 + $0x80] sm:$0xff]  ;;  %v27_v2 = vld [vmem:[%s2650_s0 + $0x8] sm:$0xff]  ;;  %v29_v7 = vlaneseq }
   0xf   :  { %v26_v1 = vld [vmem:[%s2650_s0] sm:$0xff]  ;;  %2043 = vmatprep.subr.msk.mxu0 %vm40_vm0, %v28_v0  ;;  %v2347_v3 = vld [vmem:[#allocation2 + $0x18] sm:$0xff]  ;;  %v2351_v4 = vld [vmem:[#allocation2 + $0x10] sm:$0xff]  ;;  %vm151_vm2 = vcmask 261120   ;;  %vm247_vm3 = vcmask 130048   ;;  %s2315_s0 = smov 80  }
  0x10   :  { %2045 = vmatprep.mubr.msk.f32.mxu0 %vm33_vm1, %v26_v1  ;;  %2044 = vmatpush3.msk.msra.mxu0 %vm40_vm0, %v28_v0  ;;  %v2355_v5 = vld [vmem:[#allocation2 + $0x8] sm:$0xff]  ;;  %v2359_v6 = vld [vmem:[#allocation2] sm:$0xff]  ;;  %v2363_v8 = vshrl.u32 %v29_v7, 7  ;;  %s2316_s1 = smov 112   ;;  %v125_v29 = vand.u32 127, %v29_v7  ;;  %s2318_s20 = smov 96  }
  0x11   :  { %2048 = vmatprep.subr.mxu1 %v2347_v3  ;;  %2046 = vmatmul.mubr.msk.f32.vlgmr.msra.gmra.mxu0 %vm33_vm1, %v27_v2  ;;  %v2378_v16 = vld [vmem:[#allocation2 + $0x88] sm:$0xff]  ;;  %v2317_v36 = vmov -1e+30   ;;  %s2319_s21 = smov 32   ;;  %vm2321_vm8 = vmmov 0   ;;  %vm1877_vm9 = vcmask 25600  }
  0x12   :  { %2049 = vmatpush3.msra.mxu1 %v2347_v3  ;;  %v2366_v9 = vsub.s32 4, %v2363_v8  ;;  %v149_v15 = vsub.s32 0, %v2363_v8  ;;  %v121_v28 = vadd.s32 8, %v2363_v8  ;;  %v126_v31 = vxor.u32 %v125_v29, %v2363_v8  ;;  %s2322_s22 = smov [#allocation5]  }
  0x13   :  { %2050 = vmatprep.subr.mxu1 %v2351_v4  ;;  %v122_v32 = vadd.s32 16, %v2363_v8  ;;  %v123_v33 = vadd.s32 24, %v2363_v8  ;;  %s1896_s23 = sshll.u32 %s2322_s22, 4  ;;  %s1897_s23 = int_to_ptr.vmem [resolvable:$true] %s1896_s23 }
  0x14   :  { %2051 = vmatpush3.msra.mxu1 %v2351_v4  ;;  %v32_v10 = vrot.slane %v28_v0, %v2366_v9  ;;  %v150_v17 = vrot.slane %v2378_v16, %v149_v15  ;;  %v127_v30 = vxor.u32 %v125_v29, %v121_v28  ;;  %vm130_vm5 = vcmp.lt.s32.totalorder %v126_v31, 8  ;;  %s2288_s24 = scalar_lea.vmem %s1897_s23, 32  ;;  %p2293_p6 = scmp.lt.s32.totalorder %s1897_s23, %s1897_s23 }
  0x15   :  { %2052 = vmatprep.subr.mxu1 %v2355_v5  ;;  %v128_v34 = vxor.u32 %v125_v29, %v122_v32  ;;  %v129_v39 = vxor.u32 %v125_v29, %v123_v33  ;;  %v2421_v41 = vsel %vm130_vm5, 0.0, %v2317_v36  ;;  %p2289_p5 = scmp.ne.s32.totalorder %s1897_s23, %s2288_s24  ;;  %p2294_p7 = scmp.lt.s32.totalorder %s2288_s24, %s2288_s24 }
  0x16   :  { %2053 = vmatpush3.msra.mxu1 %v2355_v5  ;;  %vm131_vm4 = vcmp.lt.s32.totalorder %v127_v30, 8 }
  0x17   :  { %2054 = vmatprep.subr.mxu1 %v2359_v6  ;;  %v2419_v37 = vsel %vm131_vm4, 0.0, %v2317_v36  ;;  %vm132_vm6 = vcmp.lt.s32.totalorder %v128_v34, 8  ;;  %vm133_vm7 = vcmp.lt.s32.totalorder %v129_v39, 8  ;;  %p2295_p8 = por %p2294_p7, %p2293_p6 }
  0x18   :  { %2055 = vmatpush3.msra.mxu1 %v2359_v6  ;;  %v2426_v48 = vsel %vm132_vm6, 0.0, %v2317_v36  ;;  %v2429_v52 = vsel %vm133_vm7, 0.0, %v2317_v36 }
  0x19   :  { %p2296_p9 = pnand %p2295_p8, %p2289_p5 }
  0xd1   :  { %v2047_v11 = vpop.f32.mrf.mxu0 }
  0xd2   :  { %v2371_v14 = vadd.f32 %v2047_v11, %v32_v10 }
  0xd3   :  { %v110_v12 = vpop.f32.mrf.mxu0 }
  0xd4   :  { %v2369_v13 = vadd.f32 %v110_v12, %v32_v10 }
  0xd6   :  { %2056 = vmatprep.mubr.msk.f32.mxu1 %vm151_vm2, %v2369_v13 }
  0xd7   :  { %2057 = vmatmul.mubr.msk.f32.vlgmr.msra.gmra.mxu1 %vm151_vm2, %v2371_v14 }
 0x197   :  { %v2058_v18 = vpop.f32.mrf.mxu1 }
 0x198   :  { %v2383_v19 = vadd.f32 %v2058_v18, %v150_v17 }
 0x199   :  { %v224_v20 = vpop.f32.mrf.mxu1 }
 0x19a   :  { %v2385_v21 = vadd.f32 %v224_v20, %v150_v17  ;;  %237 = vrot.lane.b32.xlu0 %v2383_v19, %s2315_s0 }
 0x19c   :  { %2067 = vmatprep.mubr.msk.f32.mxu0 %vm247_vm3, %v2385_v21 }
 0x19e   :  { %235 = vrot.lane.b32.xlu0 %v2385_v21, %s2315_s0 }
 0x1a2   :  { %241 = vrot.lane.b32.xlu0 %v2383_v19, %s2316_s1 }
 0x20c   :  { %v238_v22 = vpop.permute.xlu0 %237 }
 0x20d   :  { %245 = vrot.lane.b32.xlu1 %v238_v22, %s2316_s1 }
 0x210   :  { %v2396_v23 = vpop.permute.xlu0 %235 }
 0x211   :  { %243 = vrot.lane.b32.xlu1 %v2396_v23, %s2316_s1 }
 0x214   :  { %v242_v26 = vpop.permute.xlu0 %241 }
 0x215   :  { %239 = vrot.lane.b32.xlu1 %v2385_v21, %s2316_s1 }
 0x27f   :  { %v246_v24 = vpop.permute.xlu1 %245 }
 0x280   :  { %2059 = vmatprep.subr.msk.mxu0 %vm247_vm3, %v246_v24 }
 0x281   :  { %2060 = vmatpush3.xpose.msk.msra.mxu0 %vm247_vm3, %v246_v24 }
 0x283   :  { %v244_v25 = vpop.permute.xlu1 %243 }
 0x284   :  { %2061 = vmatprep.subr.msk.mxu0 %vm247_vm3, %v244_v25 }
 0x285   :  { %2062 = vmatpush3.xpose.msk.msra.mxu0 %vm247_vm3, %v244_v25 }
 0x286   :  { %2063 = vmatprep.subr.msk.mxu0 %vm247_vm3, %v242_v26 }
 0x287   :  { %v240_v27 = vpop.permute.xlu1 %239 }
 0x289   :  { %2064 = vmatpush3.xpose.msk.msra.mxu0 %vm247_vm3, %v242_v26 }
 0x28a   :  { %2065 = vmatprep.subr.msk.mxu0 %vm247_vm3, %v240_v27 }
 0x28d   :  { %2066 = vmatpush3.xpose.msk.msra.mxu0 %vm247_vm3, %v240_v27 }
 0x290   :  { %2068 = vmatmul.mubr.msk.f32.vlgmr.msra.gmra.mxu0 %vm247_vm3, %v2383_v19 }
 0x291   :  { %2070 = vmatprep.mubr.msk.f32.mxu0 %vm247_vm3, %v2396_v23 }
 0x294   :  { %2071 = vmatmul.mubr.msk.f32.gmra.mxu0 %vm247_vm3, %v238_v22 }
 0x350   :  { %v2069_v35 = vpop.f32.mrf.mxu0 }
 0x351   :  { %v350_v38 = vmul.f32 0.25, %v2069_v35 }
 0x352   :  { %v330_v40 = vpop.f32.mrf.mxu0 }
 0x353   :  { %v349_v42 = vmul.f32 0.25, %v330_v40  ;;  %v354_v43 = vadd.f32 %v350_v38, %v2419_v37 }
 0x354   :  { %v2072_v44 = vpop.f32.mrf.mxu0 }
 0x355   :  { %v360_v45 = vsel %vm151_vm2, %v354_v43, -inf  ;;  %v353_v46 = vadd.f32 %v349_v42, %v2421_v41  ;;  %v352_v49 = vmul.f32 0.25, %v2072_v44 }
 0x356   :  { %361 = vmax.xlane.f32.xlu1 %v360_v45  ;;  %v340_v47 = vpop.f32.mrf.mxu0  ;;  %v601_v45 = vsub.s32 1, %v2363_v8 }
 0x357   :  { %v351_v50 = vmul.f32 0.25, %v340_v47  ;;  %v357_v51 = vsel %vm151_vm2, %v353_v46, -inf  ;;  %v356_v55 = vadd.f32 %v352_v49, %v2429_v52 }
 0x358   :  { %358 = vmax.xlane.f32.xlu0 %v357_v51  ;;  %v602_v47 = vrot.slane %v2378_v16, %v601_v45 }
 0x359   :  { %v355_v53 = vadd.f32 %v351_v50, %v2426_v48  ;;  %v366_v56 = vsel %vm151_vm2, %v356_v55, -inf }
 0x35b   :  { %v363_v54 = vsel %vm151_vm2, %v355_v53, -inf }
 0x35c   :  { %364 = vmax.xlane.f32.xlu0 %v363_v54 }
 0x360   :  { %367 = vmax.xlane.f32.xlu0 %v366_v56 }
 0x367   :  { %407 = vrot.lane.b32.xlu1 %v238_v22, %s2318_s20 }
 0x3df   :  { %v362_v57 = vpop.xlane.xlu1 %361 }
 0x3e0   :  { %v370_v58 = vsub.f32 %v354_v43, %v362_v57 }
 0x3e1   :  { %v359_v59 = vpop.xlane.xlu0 %358 }
 0x3e2   :  { %v375_v60 = vmul.f32 1.442695, %v370_v58  ;;  %v369_v61 = vsub.f32 %v353_v46, %v359_v59 }
 0x3e3   :  { %v408_v62 = vpop.permute.xlu1 %407 }
 0x3e4   :  { %2216 = vpow2.f32 %v375_v60  ;;  %v373_v63 = vmul.f32 1.442695, %v369_v61  ;;  %2073 = vmatprep.subr.mxu1 %v408_v62 }
 0x3e5   :  { %2074 = vmatpush3.msra.mxu1 %v408_v62  ;;  %v365_v0 = vpop.xlane.xlu0 %364 }
 0x3e6   :  { %2218 = vpow2.f32 %v373_v63  ;;  %v371_v22 = vsub.f32 %v355_v53, %v365_v0 }
 0x3e8   :  { %v377_v24 = vmul.f32 1.442695, %v371_v22 }
 0x3e9   :  { %v368_v1 = vpop.xlane.xlu0 %367 }
 0x3ea   :  { %v372_v2 = vsub.f32 %v356_v55, %v368_v1 }
 0x3ec   :  { %v379_v7 = vmul.f32 1.442695, %v372_v2 }
 0x3ee   :  { %2220 = vpow2.f32 %v379_v7 }
 0x3ef   :  { %2222 = vpow2.f32 %v377_v24 }
 0x3f1   :  { %v2217_v10 = vpop.eup %2216 }
 0x3f2   :  { %v384_v11 = vsel %vm151_vm2, %v2217_v10, 0.0 }
 0x3f3   :  { %v2219_v12 = vpop.eup %2218  ;;  %385 = vadd.xlane.f32.xlu0 %v384_v11 }
 0x3f4   :  { %v381_v17 = vsel %vm151_vm2, %v2219_v12, 0.0 }
 0x3f5   :  { %382 = vadd.xlane.f32.xlu1 %v381_v17  ;;  %v143_v17 = vld [vmem:[#allocation2 + $0x28] sm:$0xff] }
 0x3fb   :  { %v2221_v18 = vpop.eup %2220 }
 0x3fc   :  { %v390_v20 = vsel %vm151_vm2, %v2221_v18, 0.0  ;;  %v2223_v25 = vpop.eup %2222 }
 0x3fd   :  { %391 = vadd.xlane.f32.xlu0 %v390_v20  ;;  %v387_v26 = vsel %vm151_vm2, %v2223_v25, 0.0 }
 0x406   :  { %403 = vrot.lane.b32.xlu1 %v2383_v19, %s2318_s20 }
 0x413   :  { %405 = vrot.lane.b32.xlu0 %v2396_v23, %s2318_s20 }
 0x417   :  { %514 = vrot.lane.b32.xlu0 %v2355_v5, %s2319_s21 }
 0x41b   :  { %609 = vrot.lane.b32.xlu0 %v2347_v3, %s2319_s21 }
 0x42a   :  { %388 = vadd.xlane.f32.xlu1 %v387_v26 }
 0x43b   :  { %401 = vrot.lane.b32.xlu1 %v2385_v21, %s2318_s20 }
 0x43f   :  { %512 = vrot.lane.b32.xlu1 %v2359_v6, %s2319_s21 }
 0x443   :  { %607 = vrot.lane.b32.xlu1 %v2351_v4, %s2319_s21 }
 0x47c   :  { %v386_v23 = vpop.xlane.xlu0 %385 }
 0x47e   :  { %v383_v19 = vpop.xlane.xlu1 %382 }
 0x47f   :  { %2224 = vrcp.f32 %v383_v19 }
 0x480   :  { %2226 = vrcp.f32 %v386_v23 }
 0x482   :  { %v404_v29 = vpop.permute.xlu1 %403 }
 0x486   :  { %v392_v27 = vpop.xlane.xlu0 %391 }
 0x487   :  { %2228 = vrcp.f32 %v392_v27 }
 0x48a   :  { %v406_v28 = vpop.permute.xlu0 %405 }
 0x48b   :  { %2075 = vmatprep.subr.mxu1 %v406_v28 }
 0x48c   :  { %v2225_v21 = vpop.eup %2224  ;;  %2076 = vmatpush3.msra.mxu1 %v406_v28 }
 0x48d   :  { %2077 = vmatprep.subr.mxu1 %v404_v29  ;;  %v397_v5 = vmul.f32 %v2225_v21, %v2219_v12  ;;  %v2227_v6 = vpop.eup %2226  ;;  %v145_v12 = vld [vmem:[#allocation2 + $0x38] sm:$0xff]  ;;  %v733_v21 = vsub.s32 5, %v2363_v8 }
 0x48e   :  { %2078 = vmatpush3.msra.mxu1 %v404_v29  ;;  %v398_v30 = vmul.f32 %v2227_v6, %v2217_v10  ;;  %v515_v31 = vpop.permute.xlu0 %514  ;;  %v728_v29 = vrot.slane %v2378_v16, %v2366_v9 }
 0x48f   :  { %2081 = vmatprep.mubr.msk.f32.mxu1 %vm151_vm2, %v397_v5  ;;  %v734_v6 = vrot.slane %v2378_v16, %v733_v21 }
 0x492   :  { %v610_v38 = vpop.permute.xlu0 %609 }
 0x493   :  { %2094 = vmatprep.subr.mxu0 %v610_v38 }
 0x494   :  { %v2229_v32 = vpop.eup %2228  ;;  %2095 = vmatpush3.msra.mxu0 %v610_v38 }
 0x495   :  { %v400_v35 = vmul.f32 %v2229_v32, %v2221_v18  ;;  %v142_v18 = vld [vmem:[#allocation2 + $0x20] sm:$0xff] }
 0x4b3   :  { %v389_v3 = vpop.xlane.xlu1 %388 }
 0x4b4   :  { %2230 = vrcp.f32 %v389_v3 }
 0x4b7   :  { %v402_v4 = vpop.permute.xlu1 %401 }
 0x4b8   :  { %2079 = vmatprep.subr.mxu1 %v402_v4 }
 0x4b9   :  { %2080 = vmatpush3.msra.mxu1 %v402_v4 }
 0x4ba   :  { %2082 = vmatmul.mubr.msk.f32.vlgmr.msra.gmra.mxu1 %vm151_vm2, %v398_v30  ;;  %2087 = vmatprep.subr.mxu1 %v515_v31 }
 0x4bb   :  { %2088 = vmatpush3.msra.mxu1 %v515_v31  ;;  %v513_v36 = vpop.permute.xlu1 %512 }
 0x4bc   :  { %2089 = vmatprep.subr.mxu1 %v513_v36 }
 0x4bd   :  { %2090 = vmatpush3.msra.mxu1 %v513_v36  ;;  %v2485_v36 = vsub.s32 2, %v2363_v8 }
 0x4be   :  { %2101 = vmatprep.subr.mxu1 %v145_v12 }
 0x4bf   :  { %v608_v39 = vpop.permute.xlu1 %607  ;;  %v740_v38 = vrot.slane %v2378_v16, %v2485_v36 }
 0x4c0   :  { %2096 = vmatprep.subr.mxu0 %v608_v39 }
 0x4c1   :  { %v2231_v33 = vpop.eup %2230  ;;  %2097 = vmatpush3.msra.mxu0 %v608_v39 }
 0x4c2   :  { %v399_v34 = vmul.f32 %v2231_v33, %v2223_v25 }
 0x4c4   :  { %2084 = vmatprep.mubr.msk.f32.mxu1 %vm151_vm2, %v399_v34 }
 0x4c5   :  { %2085 = vmatmul.mubr.msk.f32.gmra.mxu1 %vm151_vm2, %v400_v35 }
 0x57a   :  { %v2083_v40 = vpop.f32.mrf.mxu1 }
 0x57c   :  { %v491_v42 = vpop.f32.mrf.mxu1 }
 0x57d   :  { %2091 = vmatprep.mubr.msk.f32.mxu1 %vm247_vm3, %v491_v42 }
 0x57e   :  { %2092 = vmatmul.mubr.msk.f32.vlgmr.msra.gmra.mxu1 %vm247_vm3, %v2083_v40 }
 0x57f   :  { %2102 = vmatpush3.msra.mxu1 %v145_v12 }
 0x585   :  { %v2086_v43 = vpop.f32.mrf.mxu1 }
 0x587   :  { %v501_v44 = vpop.f32.mrf.mxu1 }
 0x588   :  { %2098 = vmatprep.mubr.msk.f32.mxu0 %vm247_vm3, %v501_v44 }
 0x589   :  { %2099 = vmatmul.mubr.msk.f32.vlgmr.msra.gmra.mxu0 %vm247_vm3, %v2086_v43 }
 0x63e   :  { %v2093_v46 = vpop.f32.mrf.mxu1 }
 0x63f   :  { %v604_v50 = vadd.f32 %v2093_v46, %v602_v47 }
 0x640   :  { %v590_v49 = vpop.f32.mrf.mxu1 }
 0x641   :  { %v603_v53 = vadd.f32 %v602_v47, %v590_v49  ;;  %v826_v47 = vsub.s32 3, %v2363_v8 }
 0x643   :  { %v827_v49 = vrot.slane %v2378_v16, %v826_v47 }
 0x649   :  { %v2100_v51 = vpop.f32.mrf.mxu0 }
 0x64a   :  { %v695_v54 = vadd.f32 %v2100_v51, %v604_v50 }
 0x64b   :  { %v685_v55 = vpop.f32.mrf.mxu0 }
 0x64c   :  { %v694_v56 = vadd.f32 %v685_v55, %v603_v53  ;;  %v697_v57 = vadd.f32 %v695_v54, %v2371_v14 }
 0x64e   :  { %v701_v58 = vsel %vm151_vm2, %v697_v57, 0.0  ;;  %v696_v59 = vadd.f32 %v694_v56, %v2369_v13  ;;  %v144_v13 = vld [vmem:[#allocation2 + $0x30] sm:$0xff] }
 0x64f   :  { %702 = vadd.xlane.f32.xlu1 %v701_v58  ;;  %2103 = vmatprep.subr.mxu1 %v144_v13 }
 0x650   :  { %v698_v60 = vsel %vm151_vm2, %v696_v59, 0.0  ;;  %2104 = vmatpush3.msra.mxu1 %v144_v13 }
 0x651   :  { %699 = vadd.xlane.f32.xlu0 %v698_v60  ;;  %2105 = vmatprep.subr.mxu1 %v143_v17 }
 0x652   :  { %2106 = vmatpush3.msra.mxu1 %v143_v17 }
 0x653   :  { %2107 = vmatprep.subr.mxu1 %v142_v18 }
 0x654   :  { %2108 = vmatpush3.msra.mxu1 %v142_v18 }
 0x660   :  { %838 = vrot.lane.b32.xlu1 %v145_v12, %s2318_s20  ;;  %v2505_v12 = vld [vmem:[#allocation2 + $0x48] sm:$0xff] }
 0x664   :  { %834 = vrot.lane.b32.xlu1 %v143_v17, %s2318_s20 }
 0x668   :  { %832 = vrot.lane.b32.xlu1 %v142_v18, %s2318_s20 }
 0x6d8   :  { %v703_v61 = vpop.xlane.xlu1 %702 }
 0x6d9   :  { %v706_v62 = vmul.f32 0.03125, %v703_v61 }
 0x6da   :  { %v700_v63 = vpop.xlane.xlu0 %699 }
 0x6db   :  { %v705_v0 = vmul.f32 0.03125, %v700_v63  ;;  %v708_v1 = vsub.f32 %v697_v57, %v706_v62 }
 0x6dc   :  { %v839_v20 = vpop.permute.xlu1 %838 }
 0x6dd   :  { %v707_v2 = vsub.f32 %v696_v59, %v705_v0  ;;  %v710_v11 = vmul.f32 %v708_v1, %v708_v1  ;;  %2112 = vmatprep.subr.mxu0 %v839_v20 }
 0x6de   :  { %2113 = vmatpush3.msra.mxu0 %v839_v20 }
 0x6df   :  { %v709_v7 = vmul.f32 %v707_v2, %v707_v2  ;;  %v714_v14 = vsel %vm151_vm2, %v710_v11, 0.0  ;;  %v2499_v11 = vld [vmem:[#allocation2 + $0x58] sm:$0xff] }
 0x6e0   :  { %v835_v28 = vpop.permute.xlu1 %834  ;;  %2123 = vmatprep.subr.mxu1 %v2499_v11 }
 0x6e1   :  { %v711_v10 = vsel %vm151_vm2, %v709_v7, 0.0 }
 0x6e2   :  { %712 = vadd.xlane.f32.xlu0 %v711_v10 }
 0x6e4   :  { %v833_v35 = vpop.permute.xlu1 %832 }
 0x6e6   :  { %715 = vadd.xlane.f32.xlu0 %v714_v14  ;;  %v2501_v14 = vld [vmem:[#allocation2 + $0x50] sm:$0xff] }
 0x6fc   :  { %836 = vrot.lane.b32.xlu0 %v144_v13, %s2318_s20  ;;  %v2511_v13 = vld [vmem:[#allocation2 + $0x40] sm:$0xff] }
 0x76b   :  { %v713_v22 = vpop.xlane.xlu0 %712 }
 0x76c   :  { %v717_v24 = vmul.f32 0.03125, %v713_v22 }
 0x76e   :  { %v719_v25 = vadd.f32 1e-05, %v717_v24 }
 0x76f   :  { %v716_v26 = vpop.xlane.xlu0 %715 }
 0x770   :  { %2232 = vrsqrt.f32 %v719_v25  ;;  %v718_v19 = vmul.f32 0.03125, %v716_v26  ;;  %v955_v26 = vsub.s32 6, %v2363_v8 }
 0x772   :  { %v720_v23 = vadd.f32 1e-05, %v718_v19  ;;  %v961_v19 = vsub.s32 7, %v2363_v8 }
 0x773   :  { %v837_v27 = vpop.permute.xlu0 %836 }
 0x774   :  { %2234 = vrsqrt.f32 %v720_v23  ;;  %2114 = vmatprep.subr.mxu0 %v837_v27  ;;  %v956_v23 = vrot.slane %v2378_v16, %v955_v26 }
 0x775   :  { %2115 = vmatpush3.msra.mxu0 %v837_v27 }
 0x776   :  { %2116 = vmatprep.subr.mxu0 %v835_v28 }
 0x777   :  { %2117 = vmatpush3.msra.mxu0 %v835_v28 }
 0x778   :  { %2118 = vmatprep.subr.mxu0 %v833_v35 }
 0x779   :  { %2119 = vmatpush3.msra.mxu0 %v833_v35 }
 0x77d   :  { %v2233_v5 = vpop.eup %2232 }
 0x77e   :  { %v723_v3 = vmul.f32 %v2233_v5, %v707_v2 }
 0x780   :  { %v729_v4 = vmul.f32 %v728_v29, %v723_v3 }
 0x781   :  { %v2235_v30 = vpop.eup %2234 }
 0x782   :  { %v724_v31 = vmul.f32 %v2235_v30, %v708_v1  ;;  %v735_v32 = vadd.f32 %v734_v6, %v729_v4 }
 0x784   :  { %v730_v33 = vmul.f32 %v728_v29, %v724_v31  ;;  %2109 = vmatprep.mubr.msk.f32.mxu1 %vm151_vm2, %v735_v32  ;;  %v962_v29 = vrot.slane %v2378_v16, %v961_v19 }
 0x786   :  { %v736_v34 = vadd.f32 %v734_v6, %v730_v33 }
 0x788   :  { %2110 = vmatmul.mubr.msk.f32.vlgmr.msra.gmra.mxu1 %vm151_vm2, %v736_v34 }
 0x789   :  { %2124 = vmatpush3.msra.mxu1 %v2499_v11 }
 0x78a   :  { %2125 = vmatprep.subr.mxu1 %v2501_v14 }
 0x78b   :  { %2126 = vmatpush3.msra.mxu1 %v2501_v14 }
 0x78c   :  { %2127 = vmatprep.subr.mxu1 %v2505_v12 }
 0x78d   :  { %2128 = vmatpush3.msra.mxu1 %v2505_v12 }
 0x78e   :  { %2129 = vmatprep.subr.mxu1 %v2511_v13 }
 0x78f   :  { %2130 = vmatpush3.msra.mxu1 %v2511_v13 }
 0x848   :  { %v2111_v39 = vpop.f32.mrf.mxu1 }
 0x849   :  { %v819_v40 = vadd.f32 %v2111_v39, %v740_v38 }
 0x84a   :  { %v813_v42 = vpop.f32.mrf.mxu1 }
 0x84b   :  { %v814_v43 = vadd.f32 %v813_v42, %v740_v38  ;;  %v823_v46 = vmax.f32 %v819_v40, 0.0 }
 0x84d   :  { %v822_v44 = vmax.f32 %v814_v43, 0.0 }
 0x84f   :  { %2120 = vmatprep.mubr.msk.f32.mxu0 %vm151_vm2, %v822_v44 }
 0x850   :  { %2121 = vmatmul.mubr.msk.f32.vlgmr.msra.gmra.mxu0 %vm151_vm2, %v823_v46 }
 0x910   :  { %v2122_v50 = vpop.f32.mrf.mxu0 }
 0x911   :  { %v922_v51 = vadd.f32 %v2122_v50, %v827_v49 }
 0x912   :  { %v916_v53 = vpop.f32.mrf.mxu0 }
 0x913   :  { %v917_v54 = vadd.f32 %v916_v53, %v827_v49  ;;  %v926_v55 = vadd.f32 %v922_v51, %v736_v34 }
 0x915   :  { %v930_v56 = vsel %vm151_vm2, %v926_v55, 0.0  ;;  %v925_v57 = vadd.f32 %v917_v54, %v735_v32  ;;  %v2531_v32 = vld [vmem:[#allocation2 + $0x90] sm:$0xff] }
 0x916   :  { %931 = vadd.xlane.f32.xlu1 %v930_v56  ;;  %v977_v16 = vrot.slane %v2531_v32, %v149_v15 }
 0x917   :  { %v927_v58 = vsel %vm151_vm2, %v925_v57, 0.0 }
 0x918   :  { %928 = vadd.xlane.f32.xlu0 %v927_v58 }
 0x99f   :  { %v932_v59 = vpop.xlane.xlu1 %931 }
 0x9a0   :  { %v934_v60 = vmul.f32 0.03125, %v932_v59 }
 0x9a1   :  { %v929_v61 = vpop.xlane.xlu0 %928 }
 0x9a2   :  { %v933_v62 = vmul.f32 0.03125, %v929_v61  ;;  %v936_v63 = vsub.f32 %v926_v55, %v934_v60 }
 0x9a4   :  { %v935_v0 = vsub.f32 %v925_v57, %v933_v62  ;;  %v938_v7 = vmul.f32 %v936_v63, %v936_v63 }
 0x9a6   :  { %v937_v1 = vmul.f32 %v935_v0, %v935_v0  ;;  %v942_v10 = vsel %vm151_vm2, %v938_v7, 0.0 }
 0x9a8   :  { %v939_v2 = vsel %vm151_vm2, %v937_v1, 0.0 }
 0x9a9   :  { %940 = vadd.xlane.f32.xlu0 %v939_v2 }
 0x9ad   :  { %943 = vadd.xlane.f32.xlu0 %v942_v10 }
 0xa32   :  { %v941_v17 = vpop.xlane.xlu0 %940 }
 0xa33   :  { %v945_v18 = vmul.f32 0.03125, %v941_v17 }
 0xa35   :  { %v947_v20 = vadd.f32 1e-05, %v945_v18 }
 0xa36   :  { %v944_v22 = vpop.xlane.xlu0 %943 }
 0xa37   :  { %2236 = vrsqrt.f32 %v947_v20  ;;  %v946_v24 = vmul.f32 0.03125, %v944_v22 }
 0xa39   :  { %v948_v25 = vadd.f32 1e-05, %v946_v24 }
 0xa3b   :  { %2238 = vrsqrt.f32 %v948_v25 }
 0xa44   :  { %v2237_v27 = vpop.eup %2236 }
 0xa45   :  { %v951_v28 = vmul.f32 %v2237_v27, %v935_v0 }
 0xa47   :  { %v957_v5 = vmul.f32 %v956_v23, %v951_v28 }
 0xa48   :  { %v2239_v3 = vpop.eup %2238 }
 0xa49   :  { %v952_v6 = vmul.f32 %v2239_v3, %v936_v63  ;;  %v2523_v4 = vadd.f32 %v962_v29, %v957_v5 }
 0xa4b   :  { %v958_v30 = vmul.f32 %v956_v23, %v952_v6  ;;  %2131 = vmatprep.mubr.msk.f32.mxu1 %vm151_vm2, %v2523_v4 }
 0xa4d   :  { %v2527_v31 = vadd.f32 %v962_v29, %v958_v30 }
 0xa4f   :  { %2132 = vmatmul.mubr.msk.f32.vlgmr.msra.gmra.mxu1 %vm151_vm2, %v2527_v31 }
 0xb0f   :  { %v2133_v33 = vpop.f32.mrf.mxu1 }
 0xb10   :  { %v2536_v34 = vadd.f32 %v2133_v33, %v977_v16 }
 0xb11   :  { %v1050_v35 = vpop.f32.mrf.mxu1 }
 0xb12   :  { %v2538_v38 = vadd.f32 %v1050_v35, %v977_v16  ;;  %1063 = vrot.lane.b32.xlu1 %v2536_v34, %s2315_s0 }
 0xb14   :  { %1061 = vrot.lane.b32.xlu0 %v2538_v38, %s2315_s0  ;;  %2142 = vmatprep.mubr.msk.f32.mxu0 %vm247_vm3, %v2538_v38 }
 0xb18   :  { %1067 = vrot.lane.b32.xlu0 %v2536_v34, %s2316_s1 }
 0xb84   :  { %v1064_v39 = vpop.permute.xlu1 %1063 }
 0xb85   :  { %1071 = vrot.lane.b32.xlu1 %v1064_v39, %s2316_s1 }
 0xb86   :  { %v2549_v15 = vpop.permute.xlu0 %1061 }
 0xb89   :  { %1069 = vrot.lane.b32.xlu1 %v2549_v15, %s2316_s1 }
 0xb8a   :  { %v1068_v43 = vpop.permute.xlu0 %1067 }
 0xb8d   :  { %1065 = vrot.lane.b32.xlu1 %v2538_v38, %s2316_s1 }
 0xbf7   :  { %v1072_v40 = vpop.permute.xlu1 %1071 }
 0xbf8   :  { %2134 = vmatprep.subr.msk.mxu0 %vm247_vm3, %v1072_v40 }
 0xbf9   :  { %2135 = vmatpush3.xpose.msk.msra.mxu0 %vm247_vm3, %v1072_v40 }
 0xbfb   :  { %v1070_v42 = vpop.permute.xlu1 %1069 }
 0xbfc   :  { %2136 = vmatprep.subr.msk.mxu0 %vm247_vm3, %v1070_v42 }
 0xbfd   :  { %2137 = vmatpush3.xpose.msk.msra.mxu0 %vm247_vm3, %v1070_v42 }
 0xbfe   :  { %2138 = vmatprep.subr.msk.mxu0 %vm247_vm3, %v1068_v43 }
 0xbff   :  { %v1066_v44 = vpop.permute.xlu1 %1065 }
 0xc01   :  { %2139 = vmatpush3.xpose.msk.msra.mxu0 %vm247_vm3, %v1068_v43 }
 0xc02   :  { %2140 = vmatprep.subr.msk.mxu0 %vm247_vm3, %v1066_v44 }
 0xc05   :  { %2141 = vmatpush3.xpose.msk.msra.mxu0 %vm247_vm3, %v1066_v44 }
 0xc08   :  { %2143 = vmatmul.mubr.msk.f32.vlgmr.msra.gmra.mxu0 %vm247_vm3, %v2536_v34 }
 0xc09   :  { %2145 = vmatprep.mubr.msk.f32.mxu0 %vm247_vm3, %v2549_v15 }
 0xc0c   :  { %2146 = vmatmul.mubr.msk.f32.gmra.mxu0 %vm247_vm3, %v1064_v39 }
 0xcc8   :  { %v2144_v46 = vpop.f32.mrf.mxu0 }
 0xcc9   :  { %v1175_v49 = vmul.f32 0.25, %v2144_v46 }
 0xcca   :  { %v1155_v50 = vpop.f32.mrf.mxu0 }
 0xccb   :  { %v1174_v51 = vmul.f32 0.25, %v1155_v50  ;;  %v1179_v53 = vadd.f32 %v1175_v49, %v2419_v37 }
 0xccc   :  { %v2147_v54 = vpop.f32.mrf.mxu0 }
 0xccd   :  { %v1185_v55 = vsel %vm151_vm2, %v1179_v53, -inf  ;;  %v1178_v56 = vadd.f32 %v1174_v51, %v2421_v41  ;;  %v1177_v58 = vmul.f32 0.25, %v2147_v54 }
 0xcce   :  { %1186 = vmax.xlane.f32.xlu1 %v1185_v55  ;;  %v1165_v57 = vpop.f32.mrf.mxu0 }
 0xccf   :  { %v1176_v59 = vmul.f32 0.25, %v1165_v57  ;;  %v1182_v60 = vsel %vm151_vm2, %v1178_v56, -inf  ;;  %v1181_v63 = vadd.f32 %v1177_v58, %v2429_v52  ;;  %v1427_v57 = vrot.slane %v2531_v32, %v601_v45 }
 0xcd0   :  { %1183 = vmax.xlane.f32.xlu0 %v1182_v60 }
 0xcd1   :  { %v1180_v61 = vadd.f32 %v1176_v59, %v2426_v48  ;;  %v1191_v37 = vsel %vm151_vm2, %v1181_v63, -inf }
 0xcd3   :  { %v1188_v62 = vsel %vm151_vm2, %v1180_v61, -inf }
 0xcd4   :  { %1189 = vmax.xlane.f32.xlu0 %v1188_v62 }
 0xcd8   :  { %1192 = vmax.xlane.f32.xlu0 %v1191_v37 }
 0xcdf   :  { %1232 = vrot.lane.b32.xlu1 %v1064_v39, %s2318_s20 }
 0xd57   :  { %v1187_v41 = vpop.xlane.xlu1 %1186 }
 0xd58   :  { %v1195_v0 = vsub.f32 %v1179_v53, %v1187_v41 }
 0xd59   :  { %v1184_v1 = vpop.xlane.xlu0 %1183 }
 0xd5a   :  { %v1200_v2 = vmul.f32 1.442695, %v1195_v0  ;;  %v1194_v7 = vsub.f32 %v1178_v56, %v1184_v1 }
 0xd5b   :  { %v1233_v10 = vpop.permute.xlu1 %1232 }
 0xd5c   :  { %2240 = vpow2.f32 %v1200_v2  ;;  %v1198_v17 = vmul.f32 1.442695, %v1194_v7  ;;  %2148 = vmatprep.subr.mxu1 %v1233_v10 }
 0xd5d   :  { %2149 = vmatpush3.msra.mxu1 %v1233_v10  ;;  %v1190_v48 = vpop.xlane.xlu0 %1189 }
 0xd5e   :  { %2242 = vpow2.f32 %v1198_v17  ;;  %v1196_v29 = vsub.f32 %v1180_v61, %v1190_v48 }
 0xd60   :  { %v1202_v5 = vmul.f32 1.442695, %v1196_v29 }
 0xd61   :  { %v1193_v18 = vpop.xlane.xlu0 %1192 }
 0xd62   :  { %v1197_v52 = vsub.f32 %v1181_v63, %v1193_v18 }
 0xd64   :  { %v1204_v20 = vmul.f32 1.442695, %v1197_v52 }
 0xd66   :  { %2244 = vpow2.f32 %v1204_v20 }
 0xd67   :  { %2246 = vpow2.f32 %v1202_v5 }
 0xd69   :  { %v2241_v22 = vpop.eup %2240 }
 0xd6a   :  { %v1209_v24 = vsel %vm151_vm2, %v2241_v22, 0.0 }
 0xd6b   :  { %v2243_v25 = vpop.eup %2242  ;;  %1210 = vadd.xlane.f32.xlu0 %v1209_v24  ;;  %v972_v24 = vld [vmem:[#allocation2 + $0x78] sm:$0xff] }
 0xd6c   :  { %v1206_v23 = vsel %vm151_vm2, %v2243_v25, 0.0 }
 0xd6d   :  { %1207 = vadd.xlane.f32.xlu1 %v1206_v23  ;;  %v969_v23 = vld [vmem:[#allocation2 + $0x60] sm:$0xff] }
 0xd73   :  { %v2245_v27 = vpop.eup %2244 }
 0xd74   :  { %v1215_v28 = vsel %vm151_vm2, %v2245_v27, 0.0  ;;  %v2247_v3 = vpop.eup %2246 }
 0xd75   :  { %1216 = vadd.xlane.f32.xlu0 %v1215_v28  ;;  %v1212_v6 = vsel %vm151_vm2, %v2247_v3, 0.0 }
 0xd7e   :  { %1228 = vrot.lane.b32.xlu1 %v2536_v34, %s2318_s20 }
 0xd8b   :  { %1230 = vrot.lane.b32.xlu0 %v2549_v15, %s2318_s20 }
 0xd8f   :  { %1339 = vrot.lane.b32.xlu0 %v2505_v12, %s2319_s21 }
 0xd93   :  { %1434 = vrot.lane.b32.xlu0 %v2499_v11, %s2319_s21 }
 0xda2   :  { %1213 = vadd.xlane.f32.xlu1 %v1212_v6 }
 0xdb3   :  { %1226 = vrot.lane.b32.xlu1 %v2538_v38, %s2318_s20 }
 0xdb7   :  { %1337 = vrot.lane.b32.xlu1 %v2511_v13, %s2319_s21 }
 0xdbb   :  { %1432 = vrot.lane.b32.xlu1 %v2501_v14, %s2319_s21 }
 0xdf4   :  { %v1211_v12 = vpop.xlane.xlu0 %1210 }
 0xdf6   :  { %v1208_v30 = vpop.xlane.xlu1 %1207 }
 0xdf7   :  { %2248 = vrcp.f32 %v1208_v30 }
 0xdf8   :  { %2250 = vrcp.f32 %v1211_v12 }
 0xdfa   :  { %v1229_v34 = vpop.permute.xlu1 %1228 }
 0xdfe   :  { %v1217_v16 = vpop.xlane.xlu0 %1216 }
 0xdff   :  { %2252 = vrcp.f32 %v1217_v16 }
 0xe02   :  { %v1231_v33 = vpop.permute.xlu0 %1230 }
 0xe03   :  { %2150 = vmatprep.subr.mxu1 %v1231_v33 }
 0xe04   :  { %v2249_v11 = vpop.eup %2248  ;;  %2151 = vmatpush3.msra.mxu1 %v1231_v33  ;;  %v1552_v33 = vrot.slane %v2531_v32, %v2366_v9  ;;  %v1564_v9 = vrot.slane %v2531_v32, %v2485_v36 }
 0xe05   :  { %2152 = vmatprep.subr.mxu1 %v1229_v34  ;;  %v1222_v35 = vmul.f32 %v2249_v11, %v2243_v25  ;;  %v2251_v38 = vpop.eup %2250  ;;  %v970_v25 = vld [vmem:[#allocation2 + $0x68] sm:$0xff] }
 0xe06   :  { %2153 = vmatpush3.msra.mxu1 %v1229_v34  ;;  %v1340_v39 = vpop.permute.xlu0 %1339  ;;  %v1223_v15 = vmul.f32 %v2251_v38, %v2241_v22 }
 0xe07   :  { %2156 = vmatprep.mubr.msk.f32.mxu1 %vm151_vm2, %v1222_v35  ;;  %v1558_v35 = vrot.slane %v2531_v32, %v733_v21 }
 0xe0a   :  { %v1435_v49 = vpop.permute.xlu0 %1434 }
 0xe0b   :  { %2169 = vmatprep.subr.mxu0 %v1435_v49 }
 0xe0c   :  { %v2253_v40 = vpop.eup %2252  ;;  %2170 = vmatpush3.msra.mxu0 %v1435_v49 }
 0xe0d   :  { %v1225_v44 = vmul.f32 %v2253_v40, %v2245_v27 }
 0xe2b   :  { %v1214_v13 = vpop.xlane.xlu1 %1213 }
 0xe2c   :  { %2254 = vrcp.f32 %v1214_v13 }
 0xe2f   :  { %v1227_v14 = vpop.permute.xlu1 %1226 }
 0xe30   :  { %2154 = vmatprep.subr.mxu1 %v1227_v14 }
 0xe31   :  { %2155 = vmatpush3.msra.mxu1 %v1227_v14 }
 0xe32   :  { %2157 = vmatmul.mubr.msk.f32.vlgmr.msra.gmra.mxu1 %vm151_vm2, %v1223_v15  ;;  %2162 = vmatprep.subr.mxu1 %v1340_v39 }
 0xe33   :  { %2163 = vmatpush3.msra.mxu1 %v1340_v39  ;;  %v1338_v46 = vpop.permute.xlu1 %1337 }
 0xe34   :  { %2164 = vmatprep.subr.mxu1 %v1338_v46 }
 0xe35   :  { %2165 = vmatpush3.msra.mxu1 %v1338_v46 }
 0xe36   :  { %2176 = vmatprep.subr.mxu1 %v972_v24 }
 0xe37   :  { %v1433_v50 = vpop.permute.xlu1 %1432 }
 0xe38   :  { %2171 = vmatprep.subr.mxu0 %v1433_v50 }
 0xe39   :  { %v2255_v42 = vpop.eup %2254  ;;  %2172 = vmatpush3.msra.mxu0 %v1433_v50 }
 0xe3a   :  { %v1224_v43 = vmul.f32 %v2255_v42, %v2247_v3 }
 0xe3c   :  { %2159 = vmatprep.mubr.msk.f32.mxu1 %vm151_vm2, %v1224_v43 }
 0xe3d   :  { %2160 = vmatmul.mubr.msk.f32.gmra.mxu1 %vm151_vm2, %v1225_v44 }
 0xef2   :  { %v2158_v51 = vpop.f32.mrf.mxu1 }
 0xef4   :  { %v1316_v53 = vpop.f32.mrf.mxu1 }
 0xef5   :  { %2166 = vmatprep.mubr.msk.f32.mxu1 %vm247_vm3, %v1316_v53 }
 0xef6   :  { %2167 = vmatmul.mubr.msk.f32.vlgmr.msra.gmra.mxu1 %vm247_vm3, %v2158_v51  ;;  %v1651_v51 = vrot.slane %v2531_v32, %v826_v47 }
 0xef7   :  { %2177 = vmatpush3.msra.mxu1 %v972_v24 }
 0xefd   :  { %v2161_v54 = vpop.f32.mrf.mxu1 }
 0xeff   :  { %v1326_v55 = vpop.f32.mrf.mxu1 }
 0xf00   :  { %2173 = vmatprep.mubr.msk.f32.mxu0 %vm247_vm3, %v1326_v55 }
 0xf01   :  { %2174 = vmatmul.mubr.msk.f32.vlgmr.msra.gmra.mxu0 %vm247_vm3, %v2161_v54 }
 0xfb6   :  { %v2168_v56 = vpop.f32.mrf.mxu1 }
 0xfb7   :  { %v1429_v59 = vadd.f32 %v2168_v56, %v1427_v57 }
 0xfb8   :  { %v1415_v58 = vpop.f32.mrf.mxu1 }
 0xfb9   :  { %v1428_v61 = vadd.f32 %v1427_v57, %v1415_v58 }
 0xfc1   :  { %v2175_v60 = vpop.f32.mrf.mxu0 }
 0xfc2   :  { %v1520_v62 = vadd.f32 %v2175_v60, %v1429_v59 }
 0xfc3   :  { %v1510_v63 = vpop.f32.mrf.mxu0 }
 0xfc4   :  { %v1519_v37 = vadd.f32 %v1510_v63, %v1428_v61  ;;  %v1522_v41 = vadd.f32 %v1520_v62, %v2527_v31 }
 0xfc6   :  { %v1526_v0 = vsel %vm151_vm2, %v1522_v41, 0.0  ;;  %v1521_v1 = vadd.f32 %v1519_v37, %v2523_v4  ;;  %v971_v4 = vld [vmem:[#allocation2 + $0x70] sm:$0xff] }
 0xfc7   :  { %1527 = vadd.xlane.f32.xlu1 %v1526_v0  ;;  %2178 = vmatprep.subr.mxu1 %v971_v4 }
 0xfc8   :  { %v1523_v2 = vsel %vm151_vm2, %v1521_v1, 0.0  ;;  %2179 = vmatpush3.msra.mxu1 %v971_v4 }
 0xfc9   :  { %1524 = vadd.xlane.f32.xlu0 %v1523_v2  ;;  %2180 = vmatprep.subr.mxu1 %v970_v25 }
 0xfca   :  { %2181 = vmatpush3.msra.mxu1 %v970_v25 }
 0xfcb   :  { %2182 = vmatprep.subr.mxu1 %v969_v23 }
 0xfcc   :  { %2183 = vmatpush3.msra.mxu1 %v969_v23 }
 0xfd8   :  { %1662 = vrot.lane.b32.xlu1 %v972_v24, %s2318_s20  ;;  %v1786_v24 = vrot.slane %v2531_v32, %v961_v19  ;;  %v1795_v19 = vld [vmem:[#allocation2 + $0x98] sm:$0xff] }
 0xfdc   :  { %1658 = vrot.lane.b32.xlu1 %v970_v25, %s2318_s20 }
 0xfe0   :  { %1656 = vrot.lane.b32.xlu1 %v969_v23, %s2318_s20 }
0x1050   :  { %v1528_v7 = vpop.xlane.xlu1 %1527 }
0x1051   :  { %v1530_v10 = vmul.f32 0.03125, %v1528_v7 }
0x1052   :  { %v1525_v45 = vpop.xlane.xlu0 %1524 }
0x1053   :  { %v1529_v17 = vmul.f32 0.03125, %v1525_v45  ;;  %v1532_v48 = vsub.f32 %v1522_v41, %v1530_v10 }
0x1054   :  { %v1663_v27 = vpop.permute.xlu1 %1662 }
0x1055   :  { %v1531_v18 = vsub.f32 %v1521_v1, %v1529_v17  ;;  %v1534_v22 = vmul.f32 %v1532_v48, %v1532_v48  ;;  %2187 = vmatprep.subr.mxu0 %v1663_v27 }
0x1056   :  { %2188 = vmatpush3.msra.mxu0 %v1663_v27 }
0x1057   :  { %v1533_v52 = vmul.f32 %v1531_v18, %v1531_v18  ;;  %v1538_v31 = vsel %vm151_vm2, %v1534_v22, 0.0 }
0x1058   :  { %v1659_v16 = vpop.permute.xlu1 %1658 }
0x1059   :  { %v1535_v20 = vsel %vm151_vm2, %v1533_v52, 0.0 }
0x105a   :  { %1536 = vadd.xlane.f32.xlu0 %v1535_v20  ;;  %v1780_v20 = vrot.slane %v2531_v32, %v955_v26  ;;  %v1796_v26 = vld [vmem:[#allocation2 + $0xa0] sm:$0xff] }
0x105c   :  { %v1657_v42 = vpop.permute.xlu1 %1656 }
0x105e   :  { %1539 = vadd.xlane.f32.xlu0 %v1538_v31 }
0x1074   :  { %1660 = vrot.lane.b32.xlu0 %v971_v4, %s2318_s20 }
0x10e3   :  { %v1537_v28 = vpop.xlane.xlu0 %1536 }
0x10e4   :  { %v1541_v29 = vmul.f32 0.03125, %v1537_v28 }
0x10e6   :  { %v1543_v5 = vadd.f32 1e-05, %v1541_v29 }
0x10e7   :  { %v1540_v3 = vpop.xlane.xlu0 %1539 }
0x10e8   :  { %2256 = vrsqrt.f32 %v1543_v5  ;;  %v1542_v6 = vmul.f32 0.03125, %v1540_v3 }
0x10ea   :  { %v1544_v30 = vadd.f32 1e-05, %v1542_v6  ;;  %v2320_v6 = vmov 0.0  }
0x10eb   :  { %v1661_v12 = vpop.permute.xlu0 %1660  ;;  %2198 = vmatprep.subr.mxu1 %v2320_v6 }
0x10ec   :  { %2258 = vrsqrt.f32 %v1544_v30  ;;  %2189 = vmatprep.subr.mxu0 %v1661_v12 }
0x10ed   :  { %2190 = vmatpush3.msra.mxu0 %v1661_v12 }
0x10ee   :  { %2191 = vmatprep.subr.mxu0 %v1659_v16 }
0x10ef   :  { %2192 = vmatpush3.msra.mxu0 %v1659_v16  ;;  %v1797_v16 = vld [vmem:[#allocation2 + $0xa8] sm:$0xff] }
0x10f0   :  { %2193 = vmatprep.subr.mxu0 %v1657_v42 }
0x10f1   :  { %2194 = vmatpush3.msra.mxu0 %v1657_v42 }
0x10f5   :  { %v2257_v11 = vpop.eup %2256 }
0x10f6   :  { %v1547_v34 = vmul.f32 %v2257_v11, %v1531_v18 }
0x10f8   :  { %v1553_v13 = vmul.f32 %v1552_v33, %v1547_v34 }
0x10f9   :  { %v2259_v38 = vpop.eup %2258 }
0x10fa   :  { %v1548_v14 = vmul.f32 %v2259_v38, %v1532_v48  ;;  %v1559_v39 = vadd.f32 %v1558_v35, %v1553_v13 }
0x10fc   :  { %v1554_v15 = vmul.f32 %v1552_v33, %v1548_v14  ;;  %2184 = vmatprep.mubr.msk.f32.mxu1 %vm151_vm2, %v1559_v39  ;;  %v1803_v33 = vrot.slane %v1797_v16, %v2485_v36 }
0x10fe   :  { %v1560_v40 = vadd.f32 %v1558_v35, %v1554_v15 }
0x1100   :  { %2185 = vmatmul.mubr.msk.f32.vlgmr.msra.gmra.mxu1 %vm151_vm2, %v1560_v40 }
0x1101   :  { %2202 = vmatprep.mubr.msk.f32.mxu1 %vm2321_vm8, %v2320_v6 }
0x11c0   :  { %v2186_v43 = vpop.f32.mrf.mxu1 }
0x11c1   :  { %v1643_v44 = vadd.f32 %v2186_v43, %v1564_v9 }
0x11c2   :  { %v1637_v46 = vpop.f32.mrf.mxu1 }
0x11c3   :  { %v1638_v21 = vadd.f32 %v1637_v46, %v1564_v9  ;;  %v1647_v50 = vmax.f32 %v1643_v44, 0.0 }
0x11c5   :  { %v1646_v49 = vmax.f32 %v1638_v21, 0.0 }
0x11c7   :  { %2195 = vmatprep.mubr.msk.f32.mxu0 %vm151_vm2, %v1646_v49 }
0x11c8   :  { %2196 = vmatmul.mubr.msk.f32.vlgmr.msra.gmra.mxu0 %vm151_vm2, %v1647_v50 }
0x1288   :  { %v2197_v53 = vpop.f32.mrf.mxu0 }
0x1289   :  { %v1746_v54 = vadd.f32 %v2197_v53, %v1651_v51 }
0x128a   :  { %v1740_v55 = vpop.f32.mrf.mxu0 }
0x128b   :  { %v1741_v56 = vadd.f32 %v1740_v55, %v1651_v51  ;;  %v1750_v57 = vadd.f32 %v1746_v54, %v1560_v40 }
0x128d   :  { %v1754_v58 = vsel %vm151_vm2, %v1750_v57, 0.0  ;;  %v1749_v59 = vadd.f32 %v1741_v56, %v1559_v39 }
0x128e   :  { %1755 = vadd.xlane.f32.xlu0 %v1754_v58 }
0x128f   :  { %v1751_v60 = vsel %vm151_vm2, %v1749_v59, 0.0 }
0x1290   :  { %1752 = vadd.xlane.f32.xlu1 %v1751_v60 }
0x1317   :  { %v1756_v61 = vpop.xlane.xlu0 %1755 }
0x1318   :  { %v1758_v62 = vmul.f32 0.03125, %v1756_v61 }
0x1319   :  { %v1753_v63 = vpop.xlane.xlu1 %1752 }
0x131a   :  { %v1760_v37 = vsub.f32 %v1750_v57, %v1758_v62  ;;  %v1757_v41 = vmul.f32 0.03125, %v1753_v63 }
0x131c   :  { %v1759_v0 = vsub.f32 %v1749_v59, %v1757_v41  ;;  %v1762_v1 = vmul.f32 %v1760_v37, %v1760_v37 }
0x131e   :  { %v1766_v47 = vsel %vm151_vm2, %v1762_v1, 0.0  ;;  %v1761_v2 = vmul.f32 %v1759_v0, %v1759_v0 }
0x131f   :  { %1767 = vadd.xlane.f32.xlu0 %v1766_v47 }
0x1320   :  { %v1763_v7 = vsel %vm151_vm2, %v1761_v2, 0.0 }
0x1323   :  { %1764 = vadd.xlane.f32.xlu0 %v1763_v7 }
0x13a8   :  { %v1768_v10 = vpop.xlane.xlu0 %1767 }
0x13a9   :  { %v1770_v45 = vmul.f32 0.03125, %v1768_v10 }
0x13ab   :  { %v1772_v17 = vadd.f32 1e-05, %v1770_v45 }
0x13ac   :  { %v1765_v48 = vpop.xlane.xlu0 %1764 }
0x13ad   :  { %2260 = vrsqrt.f32 %v1772_v17  ;;  %v1769_v18 = vmul.f32 0.03125, %v1765_v48 }
0x13af   :  { %v1771_v52 = vadd.f32 1e-05, %v1769_v18 }
0x13b1   :  { %2262 = vrsqrt.f32 %v1771_v52 }
0x13ba   :  { %v2261_v22 = vpop.eup %2260 }
0x13bb   :  { %v1776_v31 = vmul.f32 %v2261_v22, %v1760_v37 }
0x13bd   :  { %v1782_v4 = vmul.f32 %v1780_v20, %v1776_v31 }
0x13be   :  { %v2263_v25 = vpop.eup %2262 }
0x13bf   :  { %v1788_v23 = vadd.f32 %v1786_v24, %v1782_v4  ;;  %v1775_v27 = vmul.f32 %v2263_v25, %v1759_v0 }
0x13c1   :  { %v1792_v28 = vsel %vm151_vm2, %v1788_v23, 0.0  ;;  %v1781_v29 = vmul.f32 %v1780_v20, %v1775_v27 }
0x13c2   :  { %1793 = vadd.xlane.f32.xlu1 %v1792_v28 }
0x13c3   :  { %v1787_v5 = vadd.f32 %v1786_v24, %v1781_v29 }
0x13c5   :  { %v1789_v3 = vsel %vm151_vm2, %v1787_v5, 0.0 }
0x13c6   :  { %1790 = vadd.xlane.f32.xlu0 %v1789_v3 }
0x144b   :  { %v1794_v8 = vpop.xlane.xlu1 %1793 }
0x144c   :  { %v1799_v30 = vmul.f32 %v1796_v26, %v1794_v8 }
0x144e   :  { %2199 = vmatpush3.msra.mxu1 %v1799_v30 }
0x144f   :  { %v1791_v32 = vpop.xlane.xlu0 %1790  ;;  %2200 = vmatprep.subr.mxu1 %v2320_v6 }
0x1450   :  { %v1798_v12 = vmul.f32 %v1795_v19, %v1791_v32 }
0x1452   :  { %2201 = vmatpush3.msra.mxu1 %v1798_v12 }
0x1453   :  { %2203 = vmatmul.mubr.msk.f32.vlgmr.msra.gmra.mxu1 %vm247_vm3, %v1797_v16 }
0x1513   :  { %v1873_v11 = vpop.f32.mrf.mxu1 }
0x1514   :  { %v1874_v34 = vadd.f32 %v1873_v11, %v1803_v33 }
0x1515   :  { %v2204_v35 = vpop.f32.mrf.mxu1 }
0x1516   :  { %v1878_v13 = vsel %vm1877_vm9, %v1874_v34, -inf }
0x1517   :  { %1879 = vmax.xlane.f32.xlu1 %v1878_v13 }
0x15a0   :  { %v1880_v38 = vpop.xlane.xlu1 %1879 }
0x15a1   :  { %v1881_v14 = vsub.f32 %v1874_v34, %v1880_v38 }
0x15a3   :  { %v1882_v39 = vmul.f32 1.442695, %v1881_v14 }
0x15a5   :  { %2264 = vpow2.f32 %v1882_v39 }
0x15b2   :  { %v2265_v15 = vpop.eup %2264 }
0x15b3   :  { %v1884_v40 = vsel %vm1877_vm9, %v2265_v15, 0.0 }
0x15b4   :  { %1885 = vadd.xlane.f32.xlu0 %v1884_v40 }
0x163d   :  { %v1886_v42 = vpop.xlane.xlu0 %1885 }
0x163e   :  { %2266 = vrcp.f32 %v1886_v42 }
0x164b   :  { %v2267_v36 = vpop.eup %2266 }
0x164c   :  { %v1888_v9 = vmul.f32 %v2267_v36, %v2265_v15 }
0x164e   :  { %1889 = vst.msk [vmem:[#allocation5] sm:$0x3] %vm1877_vm9, %v1888_v9 }
0x164f   :  { %2299 = shalt.err (!%p2296_p9)
}
0x1650   :  { %1899 = dma.vmem_to_hbm [thread:$0]  %s1897_s23, 32, %s2652_s2, [#allocation4]  }
0x1651   :  { %2310 = dma.done.wait [#allocation4], 32  }
0x1652   :  { %2311 = vsyncadd [#allocation4], 4294967264 }
0x1653   :  { %1903 = vsyncpa [#allocation3], 1 }
0x1654   :  { %1904 = vsyncpa [#allocation4], 1 }

</bundles_post_ra>
